<compile_context>
chip_gen: v7x
topology: tpu7x:2x2x1
jax: 0.10.0
libtpu: 0.0.40
codegen_flags: <defaults>
</compile_context>

<pallas_src>
import functools
import math

import jax
import jax.numpy as jnp
from jax.experimental import pallas as pl
from jax.experimental.pallas import tpu as pltpu

LANE = 128  # TPU lane width: feature dims are padded to multiples of this.


def _flash_self_attention_kernel(
    xq_ref, xk_ref, wq_ref, wk_ref, wv_ref,      # inputs
    o_ref,                                       # output
    q_ref, m_ref, l_ref, acc_ref,                # VMEM scratch
    *, scale, seq_len, block_k,
):
    """One (query-tile, kv-tile) grid step of single-head self-attention."""
    kv = pl.program_id(1)

    @pl.when(kv == 0)
    def _init():
        m_ref[...] = jnp.full_like(m_ref, -jnp.inf)
        l_ref[...] = jnp.zeros_like(l_ref)
        acc_ref[...] = jnp.zeros_like(acc_ref)
        # Q projection once per query tile; fold 1/sqrt(d_out) into Q so the
        # scale never touches the (block_q x block_k) score tile.
        q_ref[...] = jnp.dot(
            xq_ref[...], wq_ref[...], preferred_element_type=jnp.float32
        ) * scale

    # K / V projections for this kv tile (MXU, f32 accumulation).
    k = jnp.dot(xk_ref[...], wk_ref[...], preferred_element_type=jnp.float32)
    v = jnp.dot(xk_ref[...], wv_ref[...], preferred_element_type=jnp.float32)

    # scores = Q @ K^T expressed as a last-dim contraction: no in-kernel
    # transpose (XLU traffic / materialized VMEM copy).
    s = jax.lax.dot_general(
        q_ref[...], k, (((1,), (1,)), ((), ())),
        preferred_element_type=jnp.float32)

    # Mask kv positions that are padding (seq was rounded up to the tile grid).
    kv_pos = kv * block_k + jax.lax.broadcasted_iota(jnp.int32, s.shape, 1)
    s = jnp.where(kv_pos < seq_len, s, -jnp.inf)

    # Online (flash) softmax update.
    m_prev = m_ref[...]
    m_new = jnp.maximum(m_prev, jnp.max(s, axis=-1, keepdims=True))
    alpha = jnp.exp(m_prev - m_new)
    p = jnp.exp(s - m_new)
    l_ref[...] = alpha * l_ref[...] + jnp.sum(p, axis=-1, keepdims=True)
    acc_ref[...] = alpha * acc_ref[...] + jnp.dot(
        p, v, preferred_element_type=jnp.float32)
    m_ref[...] = m_new

    @pl.when(kv == pl.num_programs(1) - 1)
    def _finalize():
        inv_l = pl.reciprocal(l_ref[...], approx=True)  # EUP slot, ~free
        o_ref[...] = (acc_ref[...] * inv_l).astype(o_ref.dtype)


def _round_up(x, m):
    return ((x + m - 1) // m) * m


def self_attention(x, w_query, w_key, w_value, *, block_q=128, block_k=128):
    """Pallas TPU implementation of the PyTorch SelfAttention forward pass."""
    seq, d_in = x.shape
    d_out = w_query.shape[1]
    scale = 1.0 / math.sqrt(d_out)  # keys.shape[-1] ** 0.5 in the reference

    # Lane-dense zero padding of the feature dims and seq padding to the grid.
    d_in_p = _round_up(d_in, LANE)
    d_out_p = _round_up(d_out, LANE)
    seq_p = _round_up(seq, math.lcm(block_q, block_k))

    f32 = jnp.float32
    x_p = jnp.zeros((seq_p, d_in_p), f32).at[:seq, :d_in].set(x.astype(f32))
    wq_p = jnp.zeros((d_in_p, d_out_p), f32).at[:d_in, :d_out].set(w_query.astype(f32))
    wk_p = jnp.zeros((d_in_p, d_out_p), f32).at[:d_in, :d_out].set(w_key.astype(f32))
    wv_p = jnp.zeros((d_in_p, d_out_p), f32).at[:d_in, :d_out].set(w_value.astype(f32))

    grid = (seq_p // block_q, seq_p // block_k)
    kernel = functools.partial(
        _flash_self_attention_kernel,
        scale=scale, seq_len=seq, block_k=block_k)

    out_p = pl.pallas_call(
        kernel,
        out_shape=jax.ShapeDtypeStruct((seq_p, d_out_p), f32),
        grid_spec=pltpu.PrefetchScalarGridSpec(
            num_scalar_prefetch=0,
            grid=grid,
            in_specs=[
                # x tiled along the query axis (Q projection input).
                pl.BlockSpec((block_q, d_in_p), lambda qi, ki: (qi, 0)),
                # x tiled along the kv axis (K / V projection input).
                pl.BlockSpec((block_k, d_in_p), lambda qi, ki: (ki, 0)),
                # Projection weights: grid-invariant full blocks.
                pl.BlockSpec((d_in_p, d_out_p), lambda qi, ki: (0, 0)),
                pl.BlockSpec((d_in_p, d_out_p), lambda qi, ki: (0, 0)),
                pl.BlockSpec((d_in_p, d_out_p), lambda qi, ki: (0, 0)),
            ],
            # Output tile depends only on the query axis -> resident
            # accumulator across the kv (reduction) axis.
            out_specs=pl.BlockSpec((block_q, d_out_p), lambda qi, ki: (qi, 0)),
            scratch_shapes=[
                pltpu.VMEM((block_q, d_out_p), f32),  # scaled Q tile
                pltpu.VMEM((block_q, 1), f32),        # running max m
                pltpu.VMEM((block_q, 1), f32),        # running denom l
                pltpu.VMEM((block_q, d_out_p), f32),  # output accumulator
            ],
        ),
        compiler_params=pltpu.CompilerParams(
            dimension_semantics=("parallel", "arbitrary")),
    )(x_p, x_p, wq_p, wk_p, wv_p)

    # Strip seq / lane padding.
    return out_p[:seq, :d_out]


def self_attention_ref(x, w_query, w_key, w_value):
    # Pure-JAX reference mirroring the PyTorch forward.
    keys = x @ w_key
    queries = x @ w_query
    values = x @ w_value
    scores = queries @ keys.T
    weights = jax.nn.softmax(scores / (keys.shape[-1] ** 0.5), axis=-1)
    return weights @ values


if __name__ == "__main__":
    # 1) The exact token matrix from the PyTorch script: (6, 3) -> (6, 2).
    x = jnp.array(
        [[0.43, 0.15, 0.89],
         [0.55, 0.87, 0.66],
         [0.57, 0.85, 0.64],
         [0.22, 0.58, 0.33],
         [0.77, 0.25, 0.10],
         [0.05, 0.80, 0.55]],
        dtype=jnp.float32,
    )
    d_in, d_out = 3, 2
    kq, kk, kv = jax.random.split(jax.random.PRNGKey(0), 3)
    w_query = jax.random.uniform(kq, (d_in, d_out), dtype=jnp.float32)
    w_key = jax.random.uniform(kk, (d_in, d_out), dtype=jnp.float32)
    w_value = jax.random.uniform(kv, (d_in, d_out), dtype=jnp.float32)

    out = jax.block_until_ready(self_attention(x, w_query, w_key, w_value))
    ref = self_attention_ref(x, w_query, w_key, w_value)
    assert out.shape == (6, d_out), out.shape
    # Tolerance accounts for the approximate (EUP) reciprocal in the softmax.
    assert jnp.allclose(out, ref, atol=2e-3, rtol=2e-3), (out, ref)

    # 2) A larger case exercising the (query, kv) grid, seq padding and the
    #    online-softmax masking (seq not a multiple of the 128 tiles).
    seq2, d_in2, d_out2 = 300, 48, 64
    k1, k2, k3, k4 = jax.random.split(jax.random.PRNGKey(0), 4)
    x2 = jax.random.normal(k1, (seq2, d_in2), dtype=jnp.float32)
    wq2 = 0.1 * jax.random.uniform(k2, (d_in2, d_out2), dtype=jnp.float32)
    wk2 = 0.1 * jax.random.uniform(k3, (d_in2, d_out2), dtype=jnp.float32)
    wv2 = 0.1 * jax.random.uniform(k4, (d_in2, d_out2), dtype=jnp.float32)

    out2 = jax.block_until_ready(self_attention(x2, wq2, wk2, wv2))
    ref2 = self_attention_ref(x2, wq2, wk2, wv2)
    assert out2.shape == (seq2, d_out2), out2.shape
    assert jnp.allclose(out2, ref2, atol=2e-3, rtol=2e-3), float(
        jnp.max(jnp.abs(out2 - ref2)))

    print("KERNEL_OK")
</pallas_src>

<mosaic_0001>
module attributes {stable_mosaic.version = 11 : i64} {
  func.func @_flash_self_attention_kernel(%arg0: i32, %arg1: i32, %arg2: memref<128x128xf32, #tpu.memory_space<vmem>>, %arg3: memref<128x128xf32, #tpu.memory_space<vmem>>, %arg4: memref<128x128xf32, #tpu.memory_space<vmem>>, %arg5: memref<128x128xf32, #tpu.memory_space<vmem>>, %arg6: memref<128x128xf32, #tpu.memory_space<vmem>>, %arg7: memref<128x128xf32, #tpu.memory_space<vmem>>, %arg8: memref<128x128xf32, #tpu.memory_space<vmem>>, %arg9: memref<128x1xf32, #tpu.memory_space<vmem>>, %arg10: memref<128x1xf32, #tpu.memory_space<vmem>>, %arg11: memref<128x128xf32, #tpu.memory_space<vmem>>) attributes {dimension_semantics = [#tpu.dimension_semantics<parallel>, #tpu.dimension_semantics<arbitrary>], iteration_bounds = array<i64: 1, 1>, scalar_prefetch = 0 : i64, scratch_operands = 4 : i64, tpu.core_type = #tpu.core_type<tc>, window_params = [{transform_indices = @transform_0, window_bounds = array<i64: 128, 128>}, {transform_indices = @transform_1, window_bounds = array<i64: 128, 128>}, {pipeline_mode = #tpu.pipeline_mode<synchronous>, transform_indices = @transform_2, window_bounds = array<i64: 128, 128>}, {pipeline_mode = #tpu.pipeline_mode<synchronous>, transform_indices = @transform_3, window_bounds = array<i64: 128, 128>}, {pipeline_mode = #tpu.pipeline_mode<synchronous>, transform_indices = @transform_4, window_bounds = array<i64: 128, 128>}, {transform_indices = @transform_5, window_bounds = array<i64: 128, 128>}]} {
    %c0_i32 = arith.constant 0 : i32
    %0 = arith.cmpi eq, %arg1, %c0_i32 : i32
    %1 = arith.extui %0 : i1 to i32
    %c0_i32_0 = arith.constant 0 : i32
    %2 = arith.cmpi ne, %1, %c0_i32_0 : i32
    scf.if %2 {
      %cst_30 = arith.constant 0xFF800000 : f32
      %44 = vector.broadcast %cst_30 : f32 to vector<128x1xf32>
      %c0_31 = arith.constant 0 : index
      %c0_32 = arith.constant 0 : index
      %45 = vector.load %arg9[%c0_31, %c0_32] : memref<128x1xf32, #tpu.memory_space<vmem>>, vector<128x1xf32>
      tpu.vector_store %arg9[%c0_31, %c0_32], %44 {strides = array<i32>} : memref<128x1xf32, #tpu.memory_space<vmem>>, vector<128x1xf32>,
      %cst_33 = arith.constant 0.000000e+00 : f32
      %46 = vector.broadcast %cst_33 : f32 to vector<128x1xf32>
      %c0_34 = arith.constant 0 : index
      %c0_35 = arith.constant 0 : index
      %47 = vector.load %arg10[%c0_34, %c0_35] : memref<128x1xf32, #tpu.memory_space<vmem>>, vector<128x1xf32>
      tpu.vector_store %arg10[%c0_34, %c0_35], %46 {strides = array<i32>} : memref<128x1xf32, #tpu.memory_space<vmem>>, vector<128x1xf32>,
      %cst_36 = arith.constant 0.000000e+00 : f32
      %48 = vector.broadcast %cst_36 : f32 to vector<128x128xf32>
      %c0_37 = arith.constant 0 : index
      %c0_38 = arith.constant 0 : index
      %49 = vector.load %arg11[%c0_37, %c0_38] : memref<128x128xf32, #tpu.memory_space<vmem>>, vector<128x128xf32>
      tpu.vector_store %arg11[%c0_37, %c0_38], %48 {strides = array<i32>} : memref<128x128xf32, #tpu.memory_space<vmem>>, vector<128x128xf32>,
      %c0_39 = arith.constant 0 : index
      %c0_40 = arith.constant 0 : index
      %50 = vector.load %arg2[%c0_39, %c0_40] : memref<128x128xf32, #tpu.memory_space<vmem>>, vector<128x128xf32>
      %c0_41 = arith.constant 0 : index
      %c0_42 = arith.constant 0 : index
      %51 = vector.load %arg4[%c0_41, %c0_42] : memref<128x128xf32, #tpu.memory_space<vmem>>, vector<128x128xf32>
      %cst_43 = arith.constant dense<0.000000e+00> : vector<128x128xf32>
      %52 = tpu.matmul %50, %51, %cst_43 {dimension_numbers = #tpu.dot_dimension_numbers<[1], [0], [0], [1], [0, 0, 1, 1], [], []>} : vector<128x128xf32>, vector<128x128xf32>, vector<128x128xf32> -> vector<128x128xf32>
      %cst_44 = arith.constant 0.707106769 : f32
      %53 = vector.broadcast %cst_44 : f32 to vector<128x128xf32>
      %54 = arith.mulf %52, %53 : vector<128x128xf32>
      %c0_45 = arith.constant 0 : index
      %c0_46 = arith.constant 0 : index
      %55 = vector.load %arg8[%c0_45, %c0_46] : memref<128x128xf32, #tpu.memory_space<vmem>>, vector<128x128xf32>
      tpu.vector_store %arg8[%c0_45, %c0_46], %54 {strides = array<i32>} : memref<128x128xf32, #tpu.memory_space<vmem>>, vector<128x128xf32>,
    } else {
    }
    %c0 = arith.constant 0 : index
    %c0_1 = arith.constant 0 : index
    %3 = vector.load %arg3[%c0, %c0_1] : memref<128x128xf32, #tpu.memory_space<vmem>>, vector<128x128xf32>
    %c0_2 = arith.constant 0 : index
    %c0_3 = arith.constant 0 : index
    %4 = vector.load %arg5[%c0_2, %c0_3] : memref<128x128xf32, #tpu.memory_space<vmem>>, vector<128x128xf32>
    %cst = arith.constant dense<0.000000e+00> : vector<128x128xf32>
    %5 = tpu.matmul %3, %4, %cst {dimension_numbers = #tpu.dot_dimension_numbers<[1], [0], [0], [1], [0, 0, 1, 1], [], []>} : vector<128x128xf32>, vector<128x128xf32>, vector<128x128xf32> -> vector<128x128xf32>
    %c0_4 = arith.constant 0 : index
    %c0_5 = arith.constant 0 : index
    %6 = vector.load %arg3[%c0_4, %c0_5] : memref<128x128xf32, #tpu.memory_space<vmem>>, vector<128x128xf32>
    %c0_6 = arith.constant 0 : index
    %c0_7 = arith.constant 0 : index
    %7 = vector.load %arg6[%c0_6, %c0_7] : memref<128x128xf32, #tpu.memory_space<vmem>>, vector<128x128xf32>
    %cst_8 = arith.constant dense<0.000000e+00> : vector<128x128xf32>
    %8 = tpu.matmul %6, %7, %cst_8 {dimension_numbers = #tpu.dot_dimension_numbers<[1], [0], [0], [1], [0, 0, 1, 1], [], []>} : vector<128x128xf32>, vector<128x128xf32>, vector<128x128xf32> -> vector<128x128xf32>
    %c0_9 = arith.constant 0 : index
    %c0_10 = arith.constant 0 : index
    %9 = vector.load %arg8[%c0_9, %c0_10] : memref<128x128xf32, #tpu.memory_space<vmem>>, vector<128x128xf32>
    %cst_11 = arith.constant dense<0.000000e+00> : vector<128x128xf32>
    %10 = tpu.matmul %9, %5, %cst_11 {dimension_numbers = #tpu.dot_dimension_numbers<[1], [1], [0], [0], [0, 0, 1, 0], [], []>} : vector<128x128xf32>, vector<128x128xf32>, vector<128x128xf32> -> vector<128x128xf32>
    %c128_i32 = arith.constant 128 : i32
    %11 = arith.muli %arg1, %c128_i32 : i32
    %12 = tpu.iota {dimensions = array<i32: 1>} : vector<128x128xi32>
    %13 = vector.broadcast %11 : i32 to vector<128x128xi32>
    %14 = arith.addi %13, %12 : vector<128x128xi32>
    %c6_i32 = arith.constant 6 : i32
    %15 = vector.broadcast %c6_i32 : i32 to vector<128x128xi32>
    %16 = arith.cmpi slt, %14, %15 : vector<128x128xi32>
    %cst_12 = arith.constant 0xFF800000 : f32
    %17 = vector.broadcast %cst_12 : f32 to vector<128x128xf32>
    %18 = arith.select %16, %10, %17 : vector<128x128xi1>, vector<128x128xf32>
    %c0_13 = arith.constant 0 : index
    %c0_14 = arith.constant 0 : index
    %19 = vector.load %arg9[%c0_13, %c0_14] : memref<128x1xf32, #tpu.memory_space<vmem>>, vector<128x1xf32>
    %cst_15 = arith.constant dense<0xFF800000> : vector<128xf32>
    %20 = vector.multi_reduction <maximumf>, %18, %cst_15 [1] : vector<128x128xf32> to vector<128xf32>
    %21 = vector.shape_cast %20 : vector<128xf32> to vector<128x1xf32>
    %22 = arith.maximumf %19, %21 : vector<128x1xf32>
    %23 = arith.subf %19, %22 : vector<128x1xf32>
    %24 = math.exp %23 : vector<128x1xf32>
    %25 = vector.broadcast %22 : vector<128x1xf32> to vector<128x128xf32>
    %26 = arith.subf %18, %25 : vector<128x128xf32>
    %27 = math.exp %26 : vector<128x128xf32>
    %c0_16 = arith.constant 0 : index
    %c0_17 = arith.constant 0 : index
    %28 = vector.load %arg10[%c0_16, %c0_17] : memref<128x1xf32, #tpu.memory_space<vmem>>, vector<128x1xf32>
    %29 = arith.mulf %24, %28 : vector<128x1xf32>
    %cst_18 = arith.constant dense<0.000000e+00> : vector<128xf32>
    %30 = vector.multi_reduction <add>, %27, %cst_18 [1] : vector<128x128xf32> to vector<128xf32>
    %31 = vector.shape_cast %30 : vector<128xf32> to vector<128x1xf32>
    %32 = arith.addf %29, %31 : vector<128x1xf32>
    %c0_19 = arith.constant 0 : index
    %c0_20 = arith.constant 0 : index
    %33 = vector.load %arg10[%c0_19, %c0_20] : memref<128x1xf32, #tpu.memory_space<vmem>>, vector<128x1xf32>
    tpu.vector_store %arg10[%c0_19, %c0_20], %32 {strides = array<i32>} : memref<128x1xf32, #tpu.memory_space<vmem>>, vector<128x1xf32>,
    %c0_21 = arith.constant 0 : index
    %c0_22 = arith.constant 0 : index
    %34 = vector.load %arg11[%c0_21, %c0_22] : memref<128x128xf32, #tpu.memory_space<vmem>>, vector<128x128xf32>
    %35 = vector.broadcast %24 : vector<128x1xf32> to vector<128x128xf32>
    %36 = arith.mulf %35, %34 : vector<128x128xf32>
    %cst_23 = arith.constant dense<0.000000e+00> : vector<128x128xf32>
    %37 = tpu.matmul %27, %8, %cst_23 {dimension_numbers = #tpu.dot_dimension_numbers<[1], [0], [0], [1], [0, 0, 1, 1], [], []>} : vector<128x128xf32>, vector<128x128xf32>, vector<128x128xf32> -> vector<128x128xf32>
    %38 = arith.addf %36, %37 : vector<128x128xf32>
    %c0_24 = arith.constant 0 : index
    %c0_25 = arith.constant 0 : index
    %39 = vector.load %arg11[%c0_24, %c0_25] : memref<128x128xf32, #tpu.memory_space<vmem>>, vector<128x128xf32>
    tpu.vector_store %arg11[%c0_24, %c0_25], %38 {strides = array<i32>} : memref<128x128xf32, #tpu.memory_space<vmem>>, vector<128x128xf32>,
    %c0_26 = arith.constant 0 : index
    %c0_27 = arith.constant 0 : index
    %40 = vector.load %arg9[%c0_26, %c0_27] : memref<128x1xf32, #tpu.memory_space<vmem>>, vector<128x1xf32>
    tpu.vector_store %arg9[%c0_26, %c0_27], %22 {strides = array<i32>} : memref<128x1xf32, #tpu.memory_space<vmem>>, vector<128x1xf32>,
    %c0_i32_28 = arith.constant 0 : i32
    %41 = arith.cmpi eq, %arg1, %c0_i32_28 : i32
    %42 = arith.extui %41 : i1 to i32
    %c0_i32_29 = arith.constant 0 : i32
    %43 = arith.cmpi ne, %42, %c0_i32_29 : i32
    scf.if %43 {
      %c0_30 = arith.constant 0 : index
      %c0_31 = arith.constant 0 : index
      %44 = vector.load %arg10[%c0_30, %c0_31] : memref<128x1xf32, #tpu.memory_space<vmem>>, vector<128x1xf32>
      %45 = tpu.reciprocal %44 {approx = true} : vector<128x1xf32> -> vector<128x1xf32>
      %c0_32 = arith.constant 0 : index
      %c0_33 = arith.constant 0 : index
      %46 = vector.load %arg11[%c0_32, %c0_33] : memref<128x128xf32, #tpu.memory_space<vmem>>, vector<128x128xf32>
      %47 = vector.broadcast %45 : vector<128x1xf32> to vector<128x128xf32>
      %48 = arith.mulf %46, %47 : vector<128x128xf32>
      %c0_34 = arith.constant 0 : index
      %c0_35 = arith.constant 0 : index
      %49 = vector.load %arg7[%c0_34, %c0_35] : memref<128x128xf32, #tpu.memory_space<vmem>>, vector<128x128xf32>
      tpu.vector_store %arg7[%c0_34, %c0_35], %48 {strides = array<i32>} : memref<128x128xf32, #tpu.memory_space<vmem>>, vector<128x128xf32>,
    } else {
    }
    return
  }
  func.func @transform_0(%arg0: i32, %arg1: i32) -> (i32, i32) {
    %c0_i32 = arith.constant 0 : i32
    %c0_i32_0 = arith.constant 0 : i32
    return %arg0, %c0_i32 : i32, i32
  }
  func.func @transform_1(%arg0: i32, %arg1: i32) -> (i32, i32) {
    %c0_i32 = arith.constant 0 : i32
    %c0_i32_0 = arith.constant 0 : i32
    return %arg1, %c0_i32 : i32, i32
  }
  func.func @transform_2(%arg0: i32, %arg1: i32) -> (i32, i32) {
    %c0_i32 = arith.constant 0 : i32
    %c0_i32_0 = arith.constant 0 : i32
    %c0_i32_1 = arith.constant 0 : i32
    return %c0_i32, %c0_i32_0 : i32, i32
  }
  func.func @transform_3(%arg0: i32, %arg1: i32) -> (i32, i32) {
    %c0_i32 = arith.constant 0 : i32
    %c0_i32_0 = arith.constant 0 : i32
    %c0_i32_1 = arith.constant 0 : i32
    return %c0_i32, %c0_i32_0 : i32, i32
  }
  func.func @transform_4(%arg0: i32, %arg1: i32) -> (i32, i32) {
    %c0_i32 = arith.constant 0 : i32
    %c0_i32_0 = arith.constant 0 : i32
    %c0_i32_1 = arith.constant 0 : i32
    return %c0_i32, %c0_i32_0 : i32, i32
  }
  func.func @transform_5(%arg0: i32, %arg1: i32) -> (i32, i32) {
    %c0_i32 = arith.constant 0 : i32
    %c0_i32_0 = arith.constant 0 : i32
    return %arg0, %c0_i32 : i32, i32
  }
}

</mosaic_0001>

<bundles_post_ra>
// kernel: tpu_custom_call.1
= control target key start
LH: loop header
LB: loop body
LE: loop exit
PB: predicated region body
PF: predicated region fallthrough
CT: control target
= control target key end

     0   :  { %10 = vsyncpa [#allocation7], 0  ;;  %s3180_s0 = inlined_call_operand.hbm [shape: f32[128,128], index: 0, kind: input, shape index: {}]   ;;  %s3181_s1 = inlined_call_operand.hbm [shape: f32[128,128], index: 1, kind: input, shape index: {}]   ;;  %s3182_s2 = inlined_call_operand.hbm [shape: f32[128,128], index: 2, kind: input, shape index: {}]   ;;  %s3183_s3 = inlined_call_operand.hbm [shape: f32[128,128], index: 3, kind: input, shape index: {}]   ;;  %s3184_s4 = inlined_call_operand.hbm [shape: f32[128,128], index: 4, kind: input, shape index: {}]   ;;  %s3185_s5 = inlined_call_operand.hbm [shape: f32[128,128], index: 5, kind: output, shape index: {}]  }
   0x1   :  { %11 = vsyncpa [#allocation10], 0 }
   0x2   :  { %12 = vsyncpa [#allocation13], 0 }
   0x3   :  { %13 = vsyncpa [#allocation8], 0  ;;  %s2545_s18 = smov [#allocation9]   ;;  %s2546_s20 = smov [#allocation12]  }
   0x4   :  { %s31_s19 = sshll.u32 %s2545_s18, 4  ;;  %s55_s21 = sshll.u32 %s2546_s20, 4  ;;  %s32_s19 = int_to_ptr.vmem [resolvable:$true] %s31_s19  ;;  %s2586_s21 = int_to_ptr.vmem [resolvable:$true] %s55_s21 }
   0x5   :  { %s2405_s24 = scalar_lea.hbm %s3181_s1, 2048 }
   0x6   :  { %p2406_p0 = scmp.ne.s32.totalorder %s3181_s1, %s2405_s24  ;;  %p2409_p1 = scmp.lt.u32.totalorder %s2405_s24, %s3181_s1 }
   0x8   :  { %p2411_p2 = pnand %p2409_p1, %p2406_p0 }
   0xa   :  { %2414 = shalt.err (!%p2411_p2)
}
   0xb   :  { %s2415_s29 = scalar_lea.vmem %s32_s19, 2048  ;;  %p2420_p4 = scmp.lt.s32.totalorder %s32_s19, %s32_s19 }
   0xc   :  { %p2416_p3 = scmp.ne.s32.totalorder %s32_s19, %s2415_s29  ;;  %p2421_p5 = scmp.lt.s32.totalorder %s2415_s29, %s2415_s29 }
   0xe   :  { %p2422_p6 = por %p2421_p5, %p2420_p4 }
  0x10   :  { %p2423_p7 = pnand %p2422_p6, %p2416_p3 }
  0x12   :  { %2426 = shalt.err (!%p2423_p7)
}
  0x13   :  { %s2547_s30 = smov 128   ;;  %s2548_s6 = smov 8  }
  0x14   :  { %37 = dma.hbm_to_vmem [thread:$0]  %s3181_s1, 2048, %s32_s19, [#allocation10], %s2547_s30, %s2547_s30, %s2548_s6  }
  0x15   :  { %s2427_s11 = scalar_lea.hbm %s3183_s3, 2048 }
  0x16   :  { %p2428_p8 = scmp.ne.s32.totalorder %s3183_s3, %s2427_s11  ;;  %p2431_p9 = scmp.lt.u32.totalorder %s2427_s11, %s3183_s3 }
  0x18   :  { %p2433_p10 = pnand %p2431_p9, %p2428_p8 }
  0x1a   :  { %2436 = shalt.err (!%p2433_p10)
}
  0x1b   :  { %s2437_s16 = scalar_lea.vmem %s2586_s21, 2048  ;;  %p2442_p12 = scmp.lt.s32.totalorder %s2586_s21, %s2586_s21 }
  0x1c   :  { %p2438_p11 = scmp.ne.s32.totalorder %s2586_s21, %s2437_s16  ;;  %p2443_p13 = scmp.lt.s32.totalorder %s2437_s16, %s2437_s16 }
  0x1e   :  { %p2444_p0 = por %p2443_p13, %p2442_p12 }
  0x20   :  { %p2445_p1 = pnand %p2444_p0, %p2438_p11 }
  0x22   :  { %2448 = shalt.err (!%p2445_p1)
}
  0x23   :  { %61 = dma.hbm_to_vmem [thread:$0]  %s3183_s3, 2048, %s2586_s21, [#allocation13], %s2547_s30, %s2547_s30, %s2548_s6  }
  0x24   :  { %s2549_s18 = smov [#allocation6]   ;;  %s2550_s20 = smov [#allocation11]  }
  0x25   :  { %s19_s19 = sshll.u32 %s2549_s18, 4  ;;  %s43_s22 = sshll.u32 %s2550_s20, 4  ;;  %s20_s19 = int_to_ptr.vmem [resolvable:$true] %s19_s19  ;;  %s2623_s22 = int_to_ptr.vmem [resolvable:$true] %s43_s22 }
  0x26   :  { %s2449_s25 = scalar_lea.hbm %s3180_s0, 2048 }
  0x27   :  { %p2450_p2 = scmp.ne.s32.totalorder %s3180_s0, %s2449_s25  ;;  %p2453_p3 = scmp.lt.u32.totalorder %s2449_s25, %s3180_s0 }
  0x29   :  { %p2455_p4 = pnand %p2453_p3, %p2450_p2 }
  0x2b   :  { %2458 = shalt.err (!%p2455_p4)
}
  0x2c   :  { %s2459_s3 = scalar_lea.vmem %s20_s19, 2048  ;;  %p2464_p6 = scmp.lt.s32.totalorder %s20_s19, %s20_s19 }
  0x2d   :  { %p2460_p5 = scmp.ne.s32.totalorder %s20_s19, %s2459_s3  ;;  %p2465_p7 = scmp.lt.s32.totalorder %s2459_s3, %s2459_s3 }
  0x2f   :  { %p2466_p8 = por %p2465_p7, %p2464_p6 }
  0x31   :  { %p2467_p9 = pnand %p2466_p8, %p2460_p5 }
  0x33   :  { %2470 = shalt.err (!%p2467_p9)
}
  0x34   :  { %25 = dma.hbm_to_vmem [thread:$0]  %s3180_s0, 2048, %s20_s19, [#allocation7], %s2547_s30, %s2547_s30, %s2548_s6  }
  0x35   :  { %s2471_s10 = scalar_lea.hbm %s3182_s2, 2048 }
  0x36   :  { %p2472_p10 = scmp.ne.s32.totalorder %s3182_s2, %s2471_s10  ;;  %p2475_p11 = scmp.lt.u32.totalorder %s2471_s10, %s3182_s2 }
  0x38   :  { %p2477_p12 = pnand %p2475_p11, %p2472_p10 }
  0x3a   :  { %2480 = shalt.err (!%p2477_p12)
}
  0x3b   :  { %s2481_s15 = scalar_lea.vmem %s2623_s22, 2048  ;;  %p2486_p0 = scmp.lt.s32.totalorder %s2623_s22, %s2623_s22 }
  0x3c   :  { %p2482_p13 = scmp.ne.s32.totalorder %s2623_s22, %s2481_s15  ;;  %p2487_p1 = scmp.lt.s32.totalorder %s2481_s15, %s2481_s15 }
  0x3e   :  { %p2488_p2 = por %p2487_p1, %p2486_p0 }
  0x40   :  { %p2489_p3 = pnand %p2488_p2, %p2482_p13 }
  0x42   :  { %2492 = shalt.err (!%p2489_p3)
}
  0x43   :  { %49 = dma.hbm_to_vmem [thread:$0]  %s3182_s2, 2048, %s2623_s22, [#allocation10], %s2547_s30, %s2547_s30, %s2548_s6  }
  0x44   :  { %s2551_s1 = smov [#allocation14]   ;;  %s2493_s20 = scalar_lea.hbm %s3184_s4, 2048 }
  0x45   :  { %s67_s17 = sshll.u32 %s2551_s1, 4  ;;  %p2494_p4 = scmp.ne.s32.totalorder %s3184_s4, %s2493_s20  ;;  %s68_s17 = int_to_ptr.vmem [resolvable:$true] %s67_s17 }
  0x46   :  { %p2497_p5 = scmp.lt.u32.totalorder %s2493_s20, %s3184_s4 }
  0x48   :  { %p2499_p6 = pnand %p2497_p5, %p2494_p4 }
  0x4a   :  { %2502 = shalt.err (!%p2499_p6)
}
  0x4b   :  { %s2503_s27 = scalar_lea.vmem %s68_s17, 2048  ;;  %p2508_p8 = scmp.lt.s32.totalorder %s68_s17, %s68_s17 }
  0x4c   :  { %p2504_p7 = scmp.ne.s32.totalorder %s68_s17, %s2503_s27  ;;  %p2509_p9 = scmp.lt.s32.totalorder %s2503_s27, %s2503_s27 }
  0x4e   :  { %p2510_p10 = por %p2509_p9, %p2508_p8 }
  0x50   :  { %p2511_p11 = pnand %p2510_p10, %p2504_p7 }
  0x52   :  { %2514 = shalt.err (!%p2511_p11)
}
  0x53   :  { %73 = dma.hbm_to_vmem [thread:$0]  %s3184_s4, 2048, %s68_s17, [#allocation13], %s2547_s30, %s2547_s30, %s2548_s6  }
  0x54   :  { %2537 = dma.done.wait [#allocation7], 2048  }
  0x55   :  { %2538 = vsyncadd [#allocation7], 4294965248 }
  0x56   :  { %2539 = dma.done.wait [#allocation10], 4096  }
  0x57   :  { %2540 = vsyncadd [#allocation10], 4294963200 }
  0x58   :  { %2541 = dma.done.wait [#allocation13], 4096  }
  0x59   :  { %2542 = vsyncadd [#allocation13], 4294963200  ;;  %v367_v0 = vld [vmem:[#allocation12] sm:$0xff]  ;;  %v368_v1 = vld [vmem:[#allocation12 + $0x8] sm:$0xff]  ;;  %vm93_vm0 = vcmask 7168   ;;  %s2555_s4 = smov [#allocation15]  }
  0x5a   :  { %v369_v2 = vld [vmem:[#allocation12 + $0x10] sm:$0xff]  ;;  %v2168_v3 = vpack.c.bf16 %v368_v1, %v367_v0  ;;  %v370_v4 = vld [vmem:[#allocation12 + $0x18] sm:$0xff]  ;;  %v371_v6 = vld [vmem:[#allocation12 + $0x20] sm:$0xff]  ;;  %s1682_s28 = sshll.u32 %s2555_s4, 4  ;;  %s1683_s28 = int_to_ptr.vmem [resolvable:$true] %s1682_s28 }
  0x5b   :  { %v2172_v5 = vpack.c.bf16 %v370_v4, %v369_v2  ;;  %v372_v7 = vld [vmem:[#allocation12 + $0x28] sm:$0xff]  ;;  %v2675_v9 = vld [vmem:[#allocation9] sm:$0xff]  ;;  %v373_v10 = vld [vmem:[#allocation12 + $0x30] sm:$0xff]  ;;  %s2515_s29 = scalar_lea.vmem %s1683_s28, 2048  ;;  %p2520_p13 = scmp.lt.s32.totalorder %s1683_s28, %s1683_s28 }
  0x5c   :  { %2169 = vmatprep.subr.bf16.mxu1 %v2168_v3  ;;  %v2176_v8 = vpack.c.bf16 %v372_v7, %v371_v6  ;;  %v374_v11 = vld [vmem:[#allocation12 + $0x38] sm:$0xff]  ;;  %1944 = vmatprep.mubr.f32.mxu1 %v2675_v9  ;;  %v158_v12 = vld [vmem:[#allocation11] sm:$0xff]  ;;  %v159_v13 = vld [vmem:[#allocation11 + $0x8] sm:$0xff]  ;;  %p2516_p12 = scmp.ne.s32.totalorder %s1683_s28, %s2515_s29  ;;  %p2521_p0 = scmp.lt.s32.totalorder %s2515_s29, %s2515_s29 }
  0x5d   :  { %2171 = vmatpush3.bf16.msra.mxu1 %v2168_v3  ;;  %v2180_v14 = vpack.c.bf16 %v374_v11, %v373_v10  ;;  %v375_v15 = vld [vmem:[#allocation12 + $0x40] sm:$0xff]  ;;  %v2136_v16 = vpack.c.bf16 %v159_v13, %v158_v12  ;;  %v160_v17 = vld [vmem:[#allocation11 + $0x10] sm:$0xff]  ;;  %v161_v18 = vld [vmem:[#allocation11 + $0x18] sm:$0xff] }
  0x5e   :  { %2173 = vmatprep.subr.bf16.mxu1 %v2172_v5  ;;  %v376_v19 = vld [vmem:[#allocation12 + $0x48] sm:$0xff]  ;;  %v2140_v20 = vpack.c.bf16 %v161_v18, %v160_v17  ;;  %v162_v21 = vld [vmem:[#allocation11 + $0x20] sm:$0xff]  ;;  %v377_v24 = vld [vmem:[#allocation12 + $0x50] sm:$0xff]  ;;  %p2522_p1 = por %p2521_p0, %p2520_p13 }
  0x5f   :  { %v163_v22 = vld [vmem:[#allocation11 + $0x28] sm:$0xff]  ;;  %2137 = vmatprep.subr.bf16.mxu0 %v2136_v16  ;;  %v2184_v23 = vpack.c.bf16 %v376_v19, %v375_v15  ;;  %v378_v26 = vld [vmem:[#allocation12 + $0x58] sm:$0xff]  ;;  %v164_v27 = vld [vmem:[#allocation11 + $0x30] sm:$0xff] }
  0x60   :  { %2139 = vmatpush3.bf16.msra.mxu0 %v2136_v16  ;;  %v2144_v25 = vpack.c.bf16 %v163_v22, %v162_v21  ;;  %v165_v28 = vld [vmem:[#allocation11 + $0x38] sm:$0xff]  ;;  %v142_v29 = vld [vmem:[#allocation6] sm:$0xff]  ;;  %v2188_v30 = vpack.c.bf16 %v378_v26, %v377_v24  ;;  %v380_v33 = vld [vmem:[#allocation12 + $0x68] sm:$0xff]  ;;  %p2523_p2 = pnand %p2522_p1, %p2516_p12 }
  0x61   :  { %2175 = vmatpush3.bf16.msra.mxu1 %v2172_v5  ;;  %2141 = vmatprep.subr.bf16.mxu0 %v2140_v20  ;;  %v379_v31 = vld [vmem:[#allocation12 + $0x60] sm:$0xff]  ;;  %v2148_v32 = vpack.c.bf16 %v165_v28, %v164_v27  ;;  %v167_v35 = vld [vmem:[#allocation11 + $0x48] sm:$0xff]  ;;  %v381_v37 = vld [vmem:[#allocation12 + $0x70] sm:$0xff] }
  0x62   :  { %2177 = vmatprep.subr.bf16.mxu1 %v2176_v8  ;;  %v166_v34 = vld [vmem:[#allocation11 + $0x40] sm:$0xff]  ;;  %1888 = vmatprep.mubr.f32.mxu0 %v142_v29  ;;  %v2192_v36 = vpack.c.bf16 %v380_v33, %v379_v31  ;;  %v382_v39 = vld [vmem:[#allocation12 + $0x78] sm:$0xff]  ;;  %v168_v40 = vld [vmem:[#allocation11 + $0x50] sm:$0xff] }
  0x63   :  { %v2152_v38 = vpack.c.bf16 %v167_v35, %v166_v34  ;;  %v169_v41 = vld [vmem:[#allocation11 + $0x58] sm:$0xff]  ;;  %v2196_v42 = vpack.c.bf16 %v382_v39, %v381_v37  ;;  %v170_v44 = vld [vmem:[#allocation11 + $0x60] sm:$0xff]  ;;  %v171_v45 = vld [vmem:[#allocation11 + $0x68] sm:$0xff] }
  0x64   :  { %2143 = vmatpush3.bf16.msra.mxu0 %v2140_v20  ;;  %v2156_v43 = vpack.c.bf16 %v169_v41, %v168_v40  ;;  %v2160_v46 = vpack.c.bf16 %v171_v45, %v170_v44  ;;  %v172_v47 = vld [vmem:[#allocation11 + $0x70] sm:$0xff]  ;;  %v173_v48 = vld [vmem:[#allocation11 + $0x78] sm:$0xff]  ;;  %v2678_v49 = vld [vmem:[#allocation9 + $0x8] sm:$0xff] }
  0x65   :  { %2179 = vmatpush3.bf16.msra.mxu1 %v2176_v8  ;;  %2145 = vmatprep.subr.bf16.mxu0 %v2144_v25  ;;  %v2680_v50 = vld [vmem:[#allocation9 + $0x10] sm:$0xff]  ;;  %v2164_v51 = vpack.c.bf16 %v173_v48, %v172_v47  ;;  %v2684_v52 = vld [vmem:[#allocation9 + $0x18] sm:$0xff]  ;;  %v2686_v53 = vld [vmem:[#allocation9 + $0x20] sm:$0xff] }
  0x66   :  { %2181 = vmatprep.subr.bf16.mxu1 %v2180_v14  ;;  %v2690_v54 = vld [vmem:[#allocation9 + $0x28] sm:$0xff]  ;;  %v2692_v56 = vld [vmem:[#allocation9 + $0x30] sm:$0xff]  ;;  %v2696_v58 = vld [vmem:[#allocation9 + $0x38] sm:$0xff] }
  0x67   :  { %v143_v55 = vld [vmem:[#allocation6 + $0x8] sm:$0xff]  ;;  %v144_v57 = vld [vmem:[#allocation6 + $0x10] sm:$0xff]  ;;  %v145_v59 = vld [vmem:[#allocation6 + $0x18] sm:$0xff] }
  0x68   :  { %2147 = vmatpush3.bf16.msra.mxu0 %v2144_v25  ;;  %v2698_v60 = vld [vmem:[#allocation9 + $0x40] sm:$0xff]  ;;  %v2702_v62 = vld [vmem:[#allocation9 + $0x48] sm:$0xff]  ;;  %v2704_v0 = vld [vmem:[#allocation9 + $0x50] sm:$0xff] }
  0x69   :  { %2183 = vmatpush3.bf16.msra.mxu1 %v2180_v14  ;;  %2149 = vmatprep.subr.bf16.mxu0 %v2148_v32  ;;  %v146_v61 = vld [vmem:[#allocation6 + $0x20] sm:$0xff]  ;;  %v147_v63 = vld [vmem:[#allocation6 + $0x28] sm:$0xff]  ;;  %v148_v1 = vld [vmem:[#allocation6 + $0x30] sm:$0xff] }
  0x6a   :  { %2185 = vmatprep.subr.bf16.mxu1 %v2184_v23  ;;  %v2708_v2 = vld [vmem:[#allocation9 + $0x58] sm:$0xff]  ;;  %v2710_v4 = vld [vmem:[#allocation9 + $0x60] sm:$0xff]  ;;  %v2714_v6 = vld [vmem:[#allocation9 + $0x68] sm:$0xff] }
  0x6b   :  { %v149_v3 = vld [vmem:[#allocation6 + $0x38] sm:$0xff]  ;;  %v150_v5 = vld [vmem:[#allocation6 + $0x40] sm:$0xff]  ;;  %v151_v7 = vld [vmem:[#allocation6 + $0x48] sm:$0xff] }
  0x6c   :  { %2151 = vmatpush3.bf16.msra.mxu0 %v2148_v32  ;;  %v2716_v8 = vld [vmem:[#allocation9 + $0x70] sm:$0xff]  ;;  %v2720_v11 = vld [vmem:[#allocation9 + $0x78] sm:$0xff]  ;;  %v154_v13 = vld [vmem:[#allocation6 + $0x60] sm:$0xff] }
  0x6d   :  { %2187 = vmatpush3.bf16.msra.mxu1 %v2184_v23  ;;  %2153 = vmatprep.subr.bf16.mxu0 %v2152_v38  ;;  %v152_v10 = vld [vmem:[#allocation6 + $0x50] sm:$0xff]  ;;  %v153_v12 = vld [vmem:[#allocation6 + $0x58] sm:$0xff]  ;;  %v155_v14 = vld [vmem:[#allocation6 + $0x68] sm:$0xff] }
  0x6e   :  { %2189 = vmatprep.subr.bf16.mxu1 %v2188_v30  ;;  %v156_v15 = vld [vmem:[#allocation6 + $0x70] sm:$0xff]  ;;  %v157_v16 = vld [vmem:[#allocation6 + $0x78] sm:$0xff] }
  0x70   :  { %2155 = vmatpush3.bf16.msra.mxu0 %v2152_v38 }
  0x71   :  { %2191 = vmatpush3.bf16.msra.mxu1 %v2188_v30  ;;  %2157 = vmatprep.subr.bf16.mxu0 %v2156_v43 }
  0x72   :  { %2193 = vmatprep.subr.bf16.mxu1 %v2192_v36 }
  0x74   :  { %2159 = vmatpush3.bf16.msra.mxu0 %v2156_v43 }
  0x75   :  { %2195 = vmatpush3.bf16.msra.mxu1 %v2192_v36  ;;  %2161 = vmatprep.subr.bf16.mxu0 %v2160_v46 }
  0x76   :  { %2197 = vmatprep.subr.bf16.mxu1 %v2196_v42 }
  0x78   :  { %2163 = vmatpush3.bf16.msra.mxu0 %v2160_v46 }
  0x79   :  { %2199 = vmatpush3.bf16.msra.mxu1 %v2196_v42  ;;  %2165 = vmatprep.subr.bf16.mxu0 %v2164_v51 }
  0x7c   :  { %1945 = vmatmul.mubr.f32.vlgmr.msra.gmra.mrb[0].mxu1 %v2678_v49  ;;  %2167 = vmatpush3.bf16.msra.mxu0 %v2164_v51 }
  0x7d   :  { %1947 = vmatprep.mubr.f32.mxu1 %v2680_v50 }
  0x7f   :  { %1889 = vmatmul.mubr.f32.vlgmr.msra.gmra.mrb[0].mxu0 %v143_v55 }
  0x80   :  { %1948 = vmatmul.mubr.f32.gmra.mrb[2].mxu1 %v2684_v52  ;;  %1891 = vmatprep.mubr.f32.mxu0 %v144_v57 }
  0x81   :  { %1950 = vmatprep.mubr.f32.mxu1 %v2686_v53 }
  0x83   :  { %1892 = vmatmul.mubr.f32.gmra.mrb[2].mxu0 %v145_v59 }
  0x84   :  { %1951 = vmatmul.mubr.f32.gmra.mrb[4].mxu1 %v2690_v54  ;;  %1894 = vmatprep.mubr.f32.mxu0 %v146_v61 }
  0x85   :  { %1953 = vmatprep.mubr.f32.mxu1 %v2692_v56 }
  0x87   :  { %1895 = vmatmul.mubr.f32.gmra.mrb[4].mxu0 %v147_v63 }
  0x88   :  { %1954 = vmatmul.mubr.f32.gmra.mrb[6].mxu1 %v2696_v58  ;;  %1897 = vmatprep.mubr.f32.mxu0 %v148_v1 }
  0x89   :  { %1956 = vmatprep.mubr.f32.mxu1 %v2698_v60 }
  0x8b   :  { %1898 = vmatmul.mubr.f32.gmra.mrb[6].mxu0 %v149_v3 }
  0x8c   :  { %1957 = vmatmul.mubr.f32.gmra.mrb[8].mxu1 %v2702_v62  ;;  %1900 = vmatprep.mubr.f32.mxu0 %v150_v5 }
  0x8d   :  { %1959 = vmatprep.mubr.f32.mxu1 %v2704_v0 }
  0x8f   :  { %1901 = vmatmul.mubr.f32.gmra.mrb[8].mxu0 %v151_v7 }
  0x90   :  { %1960 = vmatmul.mubr.f32.gmra.mrb[10].mxu1 %v2708_v2  ;;  %1903 = vmatprep.mubr.f32.mxu0 %v152_v10 }
  0x91   :  { %1962 = vmatprep.mubr.f32.mxu1 %v2710_v4 }
  0x93   :  { %1904 = vmatmul.mubr.f32.gmra.mrb[10].mxu0 %v153_v12 }
  0x94   :  { %1963 = vmatmul.mubr.f32.gmra.mrb[12].mxu1 %v2714_v6  ;;  %1906 = vmatprep.mubr.f32.mxu0 %v154_v13 }
  0x95   :  { %1965 = vmatprep.mubr.f32.mxu1 %v2716_v8 }
  0x97   :  { %1907 = vmatmul.mubr.f32.gmra.mrb[12].mxu0 %v155_v14 }
  0x98   :  { %1966 = vmatmul.mubr.f32.gmra.mrb[14].mxu1 %v2720_v11  ;;  %1909 = vmatprep.mubr.f32.mxu0 %v156_v15 }
  0x9b   :  { %1910 = vmatmul.mubr.f32.gmra.mrb[14].mxu0 %v157_v16 }
  0x9c   :  { %2000 = vmatprep.mubr.f32.mxu0 %v2675_v9 }
 0x14f   :  { %v1946_v17 = vpop.f32.mrb[0].mxu1 }
 0x150   :  { %v449_v18 = vpop.f32.mrb[1].mxu1 }
 0x151   :  { %v2232_v19 = vpack.c.bf16 %v1946_v17, %v449_v18 }
 0x152   :  { %v1890_v24 = vpop.f32.mrb[0].mxu0 }
 0x153   :  { %2233 = vmatprep.subr.bf16.mxu1 %v2232_v19  ;;  %v1949_v20 = vpop.f32.mrb[2].mxu1  ;;  %v240_v26 = vpop.f32.mrb[1].mxu0  ;;  %v320_v7 = vmul.f32 0.70710677, %v1890_v24  ;;  %v528_v24 = vld [vmem:[#allocation14] sm:$0xff] }
 0x154   :  { %2235 = vmatpush3.bf16.xpose.msra.mxu1 %v2232_v19  ;;  %v459_v21 = vpop.f32.mrb[3].mxu1  ;;  %v319_v28 = vmul.f32 0.70710677, %v240_v26 }
 0x155   :  { %v2236_v22 = vpack.c.bf16 %v1949_v20, %v459_v21 }
 0x156   :  { %2056 = vmatprep.mubr.f32.mxu1 %v319_v28  ;;  %v1893_v30 = vpop.f32.mrb[2].mxu0  ;;  %v531_v28 = vld [vmem:[#allocation14 + $0x18] sm:$0xff] }
 0x157   :  { %2237 = vmatprep.subr.bf16.mxu1 %v2236_v22  ;;  %v1952_v23 = vpop.f32.mrb[4].mxu1  ;;  %v250_v31 = vpop.f32.mrb[3].mxu0  ;;  %v322_v10 = vmul.f32 0.70710677, %v1893_v30  ;;  %v532_v30 = vld [vmem:[#allocation14 + $0x20] sm:$0xff] }
 0x158   :  { %v469_v25 = vpop.f32.mrb[5].mxu1  ;;  %v321_v5 = vmul.f32 0.70710677, %v250_v31 }
 0x159   :  { %v2240_v27 = vpack.c.bf16 %v1952_v23, %v469_v25  ;;  %v529_v25 = vld [vmem:[#allocation14 + $0x8] sm:$0xff] }
 0x15a   :  { %v1896_v34 = vpop.f32.mrb[4].mxu0  ;;  %v2200_v26 = vpack.c.bf16 %v529_v25, %v528_v24 }
 0x15b   :  { %v1955_v29 = vpop.f32.mrb[6].mxu1  ;;  %v260_v36 = vpop.f32.mrb[5].mxu0  ;;  %v324_v13 = vmul.f32 0.70710677, %v1896_v34 }
 0x15c   :  { %2239 = vmatpush3.bf16.xpose.msra.mxu1 %v2236_v22  ;;  %v479_v9 = vpop.f32.mrb[7].mxu1  ;;  %v323_v12 = vmul.f32 0.70710677, %v260_v36  ;;  %2201 = vmatprep.subr.bf16.mxu0 %v2200_v26  ;;  %v537_v36 = vld [vmem:[#allocation14 + $0x48] sm:$0xff] }
 0x15d   :  { %2241 = vmatprep.subr.bf16.mxu1 %v2240_v27  ;;  %v2244_v32 = vpack.c.bf16 %v1955_v29, %v479_v9  ;;  %2203 = vmatpush3.bf16.msra.mxu0 %v2200_v26  ;;  %v533_v9 = vld [vmem:[#allocation14 + $0x28] sm:$0xff] }
 0x15e   :  { %v1899_v39 = vpop.f32.mrb[6].mxu0  ;;  %v2208_v31 = vpack.c.bf16 %v533_v9, %v532_v30 }
 0x15f   :  { %v1958_v33 = vpop.f32.mrb[8].mxu1  ;;  %v270_v41 = vpop.f32.mrb[7].mxu0  ;;  %v326_v15 = vmul.f32 0.70710677, %v1899_v39  ;;  %v539_v39 = vld [vmem:[#allocation14 + $0x58] sm:$0xff] }
 0x160   :  { %v489_v35 = vpop.f32.mrb[9].mxu1  ;;  %v325_v14 = vmul.f32 0.70710677, %v270_v41  ;;  %v540_v41 = vld [vmem:[#allocation14 + $0x60] sm:$0xff] }
 0x161   :  { %v2248_v37 = vpack.c.bf16 %v1958_v33, %v489_v35  ;;  %v535_v33 = vld [vmem:[#allocation14 + $0x38] sm:$0xff]  ;;  %v536_v35 = vld [vmem:[#allocation14 + $0x40] sm:$0xff] }
 0x162   :  { %v1902_v44 = vpop.f32.mrb[8].mxu0 }
 0x163   :  { %v1961_v38 = vpop.f32.mrb[10].mxu1  ;;  %v280_v46 = vpop.f32.mrb[9].mxu0  ;;  %v328_v17 = vmul.f32 0.70710677, %v1902_v44 }
 0x164   :  { %2243 = vmatpush3.bf16.xpose.msra.mxu1 %v2240_v27  ;;  %v499_v40 = vpop.f32.mrb[11].mxu1  ;;  %v327_v16 = vmul.f32 0.70710677, %v280_v46  ;;  %v530_v27 = vld [vmem:[#allocation14 + $0x10] sm:$0xff]  ;;  %v2552_v46 = vmov -inf  }
 0x165   :  { %2245 = vmatprep.subr.bf16.mxu1 %v2244_v32  ;;  %v2252_v42 = vpack.c.bf16 %v1961_v38, %v499_v40  ;;  %v2204_v29 = vpack.c.bf16 %v531_v28, %v530_v27  ;;  %v538_v38 = vld [vmem:[#allocation14 + $0x50] sm:$0xff]  ;;  %94 = vst.msk [vmem:[#allocation3] sm:$0xff] %vm93_vm0, %v2552_v46  ;;  %95 = vst.msk [vmem:[#allocation3 + $0x8] sm:$0xff] %vm93_vm0, %v2552_v46 }
 0x166   :  { %v1905_v51 = vpop.f32.mrb[10].mxu0  ;;  %v2220_v40 = vpack.c.bf16 %v539_v39, %v538_v38  ;;  %96 = vst.msk [vmem:[#allocation3 + $0x10] sm:$0xff] %vm93_vm0, %v2552_v46  ;;  %97 = vst.msk [vmem:[#allocation3 + $0x18] sm:$0xff] %vm93_vm0, %v2552_v46 }
 0x167   :  { %v1964_v43 = vpop.f32.mrb[12].mxu1  ;;  %v290_v57 = vpop.f32.mrb[11].mxu0  ;;  %v330_v19 = vmul.f32 0.70710677, %v1905_v51  ;;  %2205 = vmatprep.subr.bf16.mxu0 %v2204_v29  ;;  %98 = vst.msk [vmem:[#allocation3 + $0x20] sm:$0xff] %vm93_vm0, %v2552_v46  ;;  %99 = vst.msk [vmem:[#allocation3 + $0x28] sm:$0xff] %vm93_vm0, %v2552_v46 }
 0x168   :  { %v509_v45 = vpop.f32.mrb[13].mxu1  ;;  %v329_v18 = vmul.f32 0.70710677, %v290_v57  ;;  %2207 = vmatpush3.bf16.msra.mxu0 %v2204_v29  ;;  %100 = vst.msk [vmem:[#allocation3 + $0x30] sm:$0xff] %vm93_vm0, %v2552_v46  ;;  %101 = vst.msk [vmem:[#allocation3 + $0x38] sm:$0xff] %vm93_vm0, %v2552_v46 }
 0x169   :  { %v2256_v47 = vpack.c.bf16 %v1964_v43, %v509_v45  ;;  %2209 = vmatprep.subr.bf16.mxu0 %v2208_v31  ;;  %v542_v43 = vld [vmem:[#allocation14 + $0x70] sm:$0xff]  ;;  %v543_v45 = vld [vmem:[#allocation14 + $0x78] sm:$0xff]  ;;  %102 = vst.msk [vmem:[#allocation3 + $0x40] sm:$0xff] %vm93_vm0, %v2552_v46  ;;  %103 = vst.msk [vmem:[#allocation3 + $0x48] sm:$0xff] %vm93_vm0, %v2552_v46 }
 0x16a   :  { %v1908_v61 = vpop.f32.mrb[12].mxu0  ;;  %104 = vst.msk [vmem:[#allocation3 + $0x50] sm:$0xff] %vm93_vm0, %v2552_v46  ;;  %105 = vst.msk [vmem:[#allocation3 + $0x58] sm:$0xff] %vm93_vm0, %v2552_v46 }
 0x16b   :  { %v1967_v48 = vpop.f32.mrb[14].mxu1  ;;  %v300_v63 = vpop.f32.mrb[13].mxu0  ;;  %v332_v21 = vmul.f32 0.70710677, %v1908_v61  ;;  %106 = vst.msk [vmem:[#allocation3 + $0x60] sm:$0xff] %vm93_vm0, %v2552_v46  ;;  %107 = vst.msk [vmem:[#allocation3 + $0x68] sm:$0xff] %vm93_vm0, %v2552_v46 }
 0x16c   :  { %2247 = vmatpush3.bf16.xpose.msra.mxu1 %v2244_v32  ;;  %v519_v55 = vpop.f32.mrb[15].mxu1  ;;  %v331_v20 = vmul.f32 0.70710677, %v300_v63  ;;  %2211 = vmatpush3.bf16.msra.mxu0 %v2208_v31  ;;  %v534_v32 = vld [vmem:[#allocation14 + $0x30] sm:$0xff]  ;;  %108 = vst.msk [vmem:[#allocation3 + $0x70] sm:$0xff] %vm93_vm0, %v2552_v46  ;;  %109 = vst.msk [vmem:[#allocation3 + $0x78] sm:$0xff] %vm93_vm0, %v2552_v46 }
 0x16d   :  { %2249 = vmatprep.subr.bf16.mxu1 %v2248_v37  ;;  %v2260_v59 = vpack.c.bf16 %v1967_v48, %v519_v55  ;;  %v2212_v34 = vpack.c.bf16 %v535_v33, %v534_v32  ;;  %v2553_v63 = vmov 0   ;;  %v2854_v30 = vld [vmem:[#allocation3] sm:$0xff] }
 0x16e   :  { %v1911_v1 = vpop.f32.mrb[14].mxu0  ;;  %2307 = vset.pattern.permute.xlu0 %v2553_v63  ;;  %2308 = vset.pattern.permute.xlu1 %v2553_v63 }
 0x16f   :  { %v310_v3 = vpop.f32.mrb[15].mxu0  ;;  %v334_v23 = vmul.f32 0.70710677, %v1911_v1  ;;  %2213 = vmatprep.subr.bf16.mxu0 %v2212_v34 }
 0x170   :  { %v333_v22 = vmul.f32 0.70710677, %v310_v3  ;;  %2215 = vmatpush3.bf16.msra.mxu0 %v2212_v34 }
 0x174   :  { %2251 = vmatpush3.bf16.xpose.msra.mxu1 %v2248_v37  ;;  %v2216_v37 = vpack.c.bf16 %v537_v36, %v536_v35  ;;  %v2859_v35 = vld [vmem:[#allocation3 + $0x18] sm:$0xff]  ;;  %v2861_v36 = vld [vmem:[#allocation3 + $0x8] sm:$0xff] }
 0x175   :  { %2253 = vmatprep.subr.bf16.mxu1 %v2252_v42 }
 0x176   :  { %2217 = vmatprep.subr.bf16.mxu0 %v2216_v37 }
 0x177   :  { %2219 = vmatpush3.bf16.msra.mxu0 %v2216_v37 }
 0x178   :  { %2221 = vmatprep.subr.bf16.mxu0 %v2220_v40 }
 0x17b   :  { %2223 = vmatpush3.bf16.msra.mxu0 %v2220_v40 }
 0x17c   :  { %2255 = vmatpush3.bf16.xpose.msra.mxu1 %v2252_v42  ;;  %v541_v42 = vld [vmem:[#allocation14 + $0x68] sm:$0xff] }
 0x17d   :  { %2257 = vmatprep.subr.bf16.mxu1 %v2256_v47  ;;  %v2224_v44 = vpack.c.bf16 %v541_v42, %v540_v41 }
 0x17f   :  { %2225 = vmatprep.subr.bf16.mxu0 %v2224_v44 }
 0x180   :  { %2227 = vmatpush3.bf16.msra.mxu0 %v2224_v44 }
 0x184   :  { %2259 = vmatpush3.bf16.xpose.msra.mxu1 %v2256_v47  ;;  %v2228_v47 = vpack.c.bf16 %v543_v45, %v542_v43  ;;  %v2874_v45 = vld [vmem:[#allocation3 + $0x10] sm:$0xff] }
 0x185   :  { %2261 = vmatprep.subr.bf16.mxu1 %v2260_v59 }
 0x186   :  { %2229 = vmatprep.subr.bf16.mxu0 %v2228_v47 }
 0x187   :  { %2231 = vmatpush3.bf16.msra.mxu0 %v2228_v47  ;;  %v2880_v47 = vld [vmem:[#allocation3 + $0x20] sm:$0xff] }
 0x18a   :  { %2001 = vmatmul.mubr.f32.vlgmr.msra.gmra.mrb[16].mxu0 %v2678_v49  ;;  %v851_v49 = vlaneseq }
 0x18b   :  { %2003 = vmatprep.mubr.f32.mxu0 %v2680_v50 }
 0x18c   :  { %2263 = vmatpush3.bf16.xpose.msra.mxu1 %v2260_v59  ;;  %v2755_v50 = vand.u32 127, %v851_v49 }
 0x18e   :  { %2004 = vmatmul.mubr.f32.gmra.mrb[18].mxu0 %v2684_v52  ;;  %vm855_vm1 = vcmp.lt.s32.totalorder %v2755_v50, 6 }
 0x18f   :  { %2006 = vmatprep.mubr.f32.mxu0 %v2686_v53 }
 0x192   :  { %2007 = vmatmul.mubr.f32.gmra.mrb[20].mxu0 %v2690_v54 }
 0x193   :  { %2057 = vmatmul.mubr.f32.vlgmr.msra.gmra.mrb[16].mxu1 %v320_v7  ;;  %2009 = vmatprep.mubr.f32.mxu0 %v2692_v56 }
 0x194   :  { %2059 = vmatprep.mubr.f32.mxu1 %v321_v5 }
 0x196   :  { %2010 = vmatmul.mubr.f32.gmra.mrb[22].mxu0 %v2696_v58 }
 0x197   :  { %2060 = vmatmul.mubr.f32.gmra.mrb[18].mxu1 %v322_v10  ;;  %2012 = vmatprep.mubr.f32.mxu0 %v2698_v60 }
 0x198   :  { %2062 = vmatprep.mubr.f32.mxu1 %v323_v12 }
 0x19a   :  { %2013 = vmatmul.mubr.f32.gmra.mrb[24].mxu0 %v2702_v62 }
 0x19b   :  { %2063 = vmatmul.mubr.f32.gmra.mrb[20].mxu1 %v324_v13  ;;  %2015 = vmatprep.mubr.f32.mxu0 %v2704_v0 }
 0x19c   :  { %2065 = vmatprep.mubr.f32.mxu1 %v325_v14 }
 0x19e   :  { %2016 = vmatmul.mubr.f32.gmra.mrb[26].mxu0 %v2708_v2 }
 0x19f   :  { %2066 = vmatmul.mubr.f32.gmra.mrb[22].mxu1 %v326_v15  ;;  %2018 = vmatprep.mubr.f32.mxu0 %v2710_v4 }
 0x1a0   :  { %2068 = vmatprep.mubr.f32.mxu1 %v327_v16  ;;  %v2554_v16 = vmov 0.0  }
 0x1a1   :  { %110 = vst.msk [vmem:[#allocation4] sm:$0xff] %vm93_vm0, %v2554_v16  ;;  %111 = vst.msk [vmem:[#allocation4 + $0x8] sm:$0xff] %vm93_vm0, %v2554_v16 }
 0x1a2   :  { %2019 = vmatmul.mubr.f32.gmra.mrb[28].mxu0 %v2714_v6  ;;  %112 = vst.msk [vmem:[#allocation4 + $0x10] sm:$0xff] %vm93_vm0, %v2554_v16  ;;  %113 = vst.msk [vmem:[#allocation4 + $0x18] sm:$0xff] %vm93_vm0, %v2554_v16 }
 0x1a3   :  { %2069 = vmatmul.mubr.f32.gmra.mrb[24].mxu1 %v328_v17  ;;  %2021 = vmatprep.mubr.f32.mxu0 %v2716_v8  ;;  %114 = vst.msk [vmem:[#allocation4 + $0x20] sm:$0xff] %vm93_vm0, %v2554_v16  ;;  %115 = vst.msk [vmem:[#allocation4 + $0x28] sm:$0xff] %vm93_vm0, %v2554_v16 }
 0x1a4   :  { %2071 = vmatprep.mubr.f32.mxu1 %v329_v18  ;;  %116 = vst.msk [vmem:[#allocation4 + $0x30] sm:$0xff] %vm93_vm0, %v2554_v16  ;;  %117 = vst.msk [vmem:[#allocation4 + $0x38] sm:$0xff] %vm93_vm0, %v2554_v16 }
 0x1a5   :  { %118 = vst.msk [vmem:[#allocation4 + $0x40] sm:$0xff] %vm93_vm0, %v2554_v16  ;;  %119 = vst.msk [vmem:[#allocation4 + $0x48] sm:$0xff] %vm93_vm0, %v2554_v16 }
 0x1a6   :  { %2022 = vmatmul.mubr.f32.gmra.mrb[30].mxu0 %v2720_v11  ;;  %120 = vst.msk [vmem:[#allocation4 + $0x50] sm:$0xff] %vm93_vm0, %v2554_v16  ;;  %121 = vst.msk [vmem:[#allocation4 + $0x58] sm:$0xff] %vm93_vm0, %v2554_v16 }
 0x1a7   :  { %2072 = vmatmul.mubr.f32.gmra.mrb[26].mxu1 %v330_v19  ;;  %122 = vst.msk [vmem:[#allocation4 + $0x60] sm:$0xff] %vm93_vm0, %v2554_v16  ;;  %123 = vst.msk [vmem:[#allocation4 + $0x68] sm:$0xff] %vm93_vm0, %v2554_v16 }
 0x1a8   :  { %2074 = vmatprep.mubr.f32.mxu1 %v331_v20  ;;  %124 = vst.msk [vmem:[#allocation4 + $0x70] sm:$0xff] %vm93_vm0, %v2554_v16  ;;  %125 = vst.msk [vmem:[#allocation4 + $0x78] sm:$0xff] %vm93_vm0, %v2554_v16 }
 0x1ab   :  { %2075 = vmatmul.mubr.f32.gmra.mrb[28].mxu1 %v332_v21 }
 0x1ac   :  { %2077 = vmatprep.mubr.f32.mxu1 %v333_v22 }
 0x1af   :  { %2078 = vmatmul.mubr.f32.gmra.mrb[30].mxu1 %v334_v23 }
 0x25d   :  { %v2002_v21 = vpop.f32.mrb[16].mxu0 }
 0x25e   :  { %v610_v22 = vpop.f32.mrb[17].mxu0 }
 0x25f   :  { %v2264_v23 = vpack.c.bf16 %v2002_v21, %v610_v22  ;;  %v2918_v22 = vld [vmem:[#allocation3 + $0x40] sm:$0xff] }
 0x261   :  { %v2005_v24 = vpop.f32.mrb[18].mxu0  ;;  %2265 = vmatprep.subr.bf16.mxu0 %v2264_v23 }
 0x262   :  { %v620_v25 = vpop.f32.mrb[19].mxu0  ;;  %2267 = vmatpush3.bf16.msra.mxu0 %v2264_v23 }
 0x263   :  { %v2268_v26 = vpack.c.bf16 %v2005_v24, %v620_v25 }
 0x265   :  { %v2008_v27 = vpop.f32.mrb[20].mxu0  ;;  %2269 = vmatprep.subr.bf16.mxu0 %v2268_v26 }
 0x266   :  { %v2058_v52 = vpop.f32.mrb[16].mxu1  ;;  %v630_v28 = vpop.f32.mrb[21].mxu0  ;;  %2271 = vmatpush3.bf16.msra.mxu0 %v2268_v26 }
 0x267   :  { %v771_v53 = vpop.f32.mrb[17].mxu1  ;;  %v2770_v62 = vsel %vm855_vm1, %v2058_v52, -inf  ;;  %v2272_v29 = vpack.c.bf16 %v2008_v27, %v630_v28 }
 0x268   :  { %v2760_v54 = vsel %vm855_vm1, %v771_v53, -inf }
 0x269   :  { %888 = vmax.xlane.f32.xlu0 %v2760_v54  ;;  %v2011_v9 = vpop.f32.mrb[22].mxu0  ;;  %2273 = vmatprep.subr.bf16.mxu0 %v2272_v29 }
 0x26a   :  { %v2061_v56 = vpop.f32.mrb[18].mxu1  ;;  %v640_v31 = vpop.f32.mrb[23].mxu0  ;;  %2275 = vmatpush3.bf16.msra.mxu0 %v2272_v29 }
 0x26b   :  { %v2765_v58 = vsel %vm855_vm1, %v2061_v56, -inf  ;;  %v781_v60 = vpop.f32.mrb[19].mxu1  ;;  %v2276_v33 = vpack.c.bf16 %v2011_v9, %v640_v31  ;;  %v2928_v9 = vld [vmem:[#allocation3 + $0x48] sm:$0xff] }
 0x26c   :  { %894 = vmax.xlane.f32.xlu1 %v2765_v58  ;;  %v2775_v0 = vsel %vm855_vm1, %v781_v60, -inf }
 0x26d   :  { %890 = vmax.xlane.f32.xlu0 %v2770_v62  ;;  %v2014_v37 = vpop.f32.mrb[24].mxu0  ;;  %2277 = vmatprep.subr.bf16.mxu0 %v2276_v33 }
 0x26e   :  { %v2064_v2 = vpop.f32.mrb[20].mxu1  ;;  %v650_v40 = vpop.f32.mrb[25].mxu0  ;;  %2279 = vmatpush3.bf16.msra.mxu0 %v2276_v33  ;;  %v2937_v33 = vld [vmem:[#allocation3 + $0x50] sm:$0xff] }
 0x26f   :  { %v791_v4 = vpop.f32.mrb[21].mxu1  ;;  %v2784_v8 = vsel %vm855_vm1, %v2064_v2, -inf  ;;  %v2280_v43 = vpack.c.bf16 %v2014_v37, %v650_v40 }
 0x270   :  { %892 = vmax.xlane.f32.xlu1 %v2775_v0  ;;  %v2780_v6 = vsel %vm855_vm1, %v791_v4, -inf  ;;  %v2890_v4 = vld [vmem:[#allocation3 + $0x28] sm:$0xff] }
 0x271   :  { %896 = vmax.xlane.f32.xlu0 %v2780_v6  ;;  %v2017_v49 = vpop.f32.mrb[26].mxu0  ;;  %2281 = vmatprep.subr.bf16.mxu0 %v2280_v43 }
 0x272   :  { %v2067_v11 = vpop.f32.mrb[22].mxu1  ;;  %v660_v53 = vpop.f32.mrb[27].mxu0  ;;  %2283 = vmatpush3.bf16.msra.mxu0 %v2280_v43  ;;  %v2947_v43 = vld [vmem:[#allocation3 + $0x58] sm:$0xff] }
 0x273   :  { %v801_v48 = vpop.f32.mrb[23].mxu1  ;;  %v2794_v55 = vsel %vm855_vm1, %v2067_v11, -inf  ;;  %v2284_v2 = vpack.c.bf16 %v2017_v49, %v660_v53  ;;  %v2957_v53 = vld [vmem:[#allocation3 + $0x60] sm:$0xff] }
 0x274   :  { %898 = vmax.xlane.f32.xlu1 %v2784_v8  ;;  %v2790_v51 = vsel %vm855_vm1, %v801_v48, -inf }
 0x275   :  { %900 = vmax.xlane.f32.xlu0 %v2790_v51  ;;  %2285 = vmatprep.subr.bf16.mxu0 %v2284_v2 }
 0x276   :  { %v2070_v57 = vpop.f32.mrb[24].mxu1  ;;  %2287 = vmatpush3.bf16.msra.mxu0 %v2284_v2 }
 0x277   :  { %v811_v59 = vpop.f32.mrb[25].mxu1  ;;  %v2804_v1 = vsel %vm855_vm1, %v2070_v57, -inf  ;;  %v2899_v57 = vld [vmem:[#allocation3 + $0x30] sm:$0xff] }
 0x278   :  { %902 = vmax.xlane.f32.xlu1 %v2794_v55  ;;  %v2800_v61 = vsel %vm855_vm1, %v811_v59, -inf  ;;  %v2020_v59 = vpop.f32.mrb[28].mxu0 }
 0x279   :  { %904 = vmax.xlane.f32.xlu0 %v2800_v61 }
 0x27a   :  { %v2073_v3 = vpop.f32.mrb[26].mxu1 }
 0x27b   :  { %v821_v5 = vpop.f32.mrb[27].mxu1  ;;  %v2814_v10 = vsel %vm855_vm1, %v2073_v3, -inf }
 0x27c   :  { %906 = vmax.xlane.f32.xlu1 %v2804_v1  ;;  %v2810_v7 = vsel %vm855_vm1, %v821_v5, -inf  ;;  %v670_v5 = vpop.f32.mrb[29].mxu0 }
 0x27d   :  { %908 = vmax.xlane.f32.xlu0 %v2810_v7  ;;  %v2288_v16 = vpack.c.bf16 %v2020_v59, %v670_v5  ;;  %v2023_v23 = vpop.f32.mrb[30].mxu0  ;;  %v2967_v5 = vld [vmem:[#allocation3 + $0x68] sm:$0xff] }
 0x27e   :  { %v2076_v12 = vpop.f32.mrb[28].mxu1  ;;  %v680_v26 = vpop.f32.mrb[31].mxu0 }
 0x27f   :  { %v831_v13 = vpop.f32.mrb[29].mxu1  ;;  %v2824_v15 = vsel %vm855_vm1, %v2076_v12, -inf  ;;  %2289 = vmatprep.subr.bf16.mxu0 %v2288_v16  ;;  %v2292_v29 = vpack.c.bf16 %v2023_v23, %v680_v26  ;;  %v2977_v23 = vld [vmem:[#allocation3 + $0x70] sm:$0xff] }
 0x280   :  { %910 = vmax.xlane.f32.xlu1 %v2814_v10  ;;  %v2820_v14 = vsel %vm855_vm1, %v831_v13, -inf  ;;  %2291 = vmatpush3.bf16.msra.mxu0 %v2288_v16 }
 0x281   :  { %912 = vmax.xlane.f32.xlu0 %v2820_v14  ;;  %2293 = vmatprep.subr.bf16.mxu0 %v2292_v29 }
 0x282   :  { %v2079_v17 = vpop.f32.mrb[30].mxu1 }
 0x283   :  { %v841_v18 = vpop.f32.mrb[31].mxu1  ;;  %v2850_v20 = vsel %vm855_vm1, %v2079_v17, -inf  ;;  %v2909_v17 = vld [vmem:[#allocation3 + $0x38] sm:$0xff] }
 0x284   :  { %914 = vmax.xlane.f32.xlu1 %v2824_v15  ;;  %v2846_v19 = vsel %vm855_vm1, %v841_v18, -inf  ;;  %2295 = vmatpush3.bf16.msra.mxu0 %v2292_v29 }
 0x285   :  { %916 = vmax.xlane.f32.xlu0 %v2846_v19 }
 0x288   :  { %918 = vmax.xlane.f32.xlu1 %v2850_v20 }
 0x2f6   :  { %v889_v32 = vpop.xlane.xlu0 %888 }
 0x2f7   :  { %v2857_v34 = vmax.f32 %v2854_v30, %v889_v32 }
 0x2f9   :  { %1498 = vst.msk [vmem:[#allocation3] sm:$0xff] %vm93_vm0, %v2857_v34  ;;  %v895_v39 = vpop.xlane.xlu1 %894  ;;  %986 = vperm.xlu0 %2307, %v2857_v34  }
 0x2fa   :  { %v2869_v41 = vmax.f32 %v2859_v35, %v895_v39  ;;  %v891_v42 = vpop.xlane.xlu0 %890 }
 0x2fb   :  { %v2872_v44 = vmax.f32 %v2861_v36, %v891_v42 }
 0x2fc   :  { %1501 = vst.msk [vmem:[#allocation3 + $0x18] sm:$0xff] %vm93_vm0, %v2869_v41 }
 0x2fd   :  { %v937_v50 = vsub.f32 %v2861_v36, %v2872_v44  ;;  %1499 = vst.msk [vmem:[#allocation3 + $0x8] sm:$0xff] %vm93_vm0, %v2872_v44  ;;  %v893_v52 = vpop.xlane.xlu1 %892  ;;  %991 = vperm.xlu1 %2308, %v2872_v44   ;;  %v3188_v36 = vsub.f32 %v2859_v35, %v2869_v41 }
 0x2fe   :  { %v2888_v56 = vmax.f32 %v2874_v45, %v893_v52  ;;  %v897_v60 = vpop.xlane.xlu0 %896 }
 0x2ff   :  { %v2893_v11 = vmax.f32 %v2880_v47, %v897_v60  ;;  %v958_v44 = vmul.f32 1.442695, %v3188_v36 }
 0x300   :  { %v938_v48 = vsub.f32 %v2874_v45, %v2888_v56  ;;  %1500 = vst.msk [vmem:[#allocation3 + $0x10] sm:$0xff] %vm93_vm0, %v2888_v56 }
 0x301   :  { %v899_v63 = vpop.xlane.xlu1 %898  ;;  %1001 = vperm.xlu1 %2308, %v2869_v41   ;;  %1502 = vst.msk [vmem:[#allocation3 + $0x20] sm:$0xff] %vm93_vm0, %v2893_v11 }
 0x302   :  { %v2907_v12 = vmax.f32 %v2890_v4, %v899_v63  ;;  %v901_v13 = vpop.xlane.xlu0 %900 }
 0x303   :  { %v2912_v18 = vmax.f32 %v2899_v57, %v901_v13 }
 0x304   :  { %1503 = vst.msk [vmem:[#allocation3 + $0x28] sm:$0xff] %vm93_vm0, %v2907_v12 }
 0x305   :  { %v903_v24 = vpop.xlane.xlu1 %902  ;;  %996 = vperm.xlu1 %2308, %v2888_v56   ;;  %1504 = vst.msk [vmem:[#allocation3 + $0x30] sm:$0xff] %vm93_vm0, %v2912_v18 }
 0x306   :  { %v2926_v27 = vmax.f32 %v2909_v17, %v903_v24  ;;  %v905_v28 = vpop.xlane.xlu0 %904 }
 0x307   :  { %v2931_v31 = vmax.f32 %v2918_v22, %v905_v28 }
 0x308   :  { %1505 = vst.msk [vmem:[#allocation3 + $0x38] sm:$0xff] %vm93_vm0, %v2926_v27  ;;  %v3192_v35 = vsub.f32 %v2909_v17, %v2926_v27 }
 0x309   :  { %v907_v37 = vpop.xlane.xlu1 %906  ;;  %1011 = vperm.xlu1 %2308, %v2907_v12   ;;  %1506 = vst.msk [vmem:[#allocation3 + $0x40] sm:$0xff] %vm93_vm0, %v2931_v31 }
 0x30a   :  { %v2945_v40 = vmax.f32 %v2928_v9, %v907_v37  ;;  %v909_v42 = vpop.xlane.xlu0 %908  ;;  %v2987_v37 = vld [vmem:[#allocation3 + $0x78] sm:$0xff]  ;;  %v966_v41 = vmul.f32 1.442695, %v3192_v35 }
 0x30b   :  { %v2950_v49 = vmax.f32 %v2937_v33, %v909_v42 }
 0x30c   :  { %1507 = vst.msk [vmem:[#allocation3 + $0x48] sm:$0xff] %vm93_vm0, %v2945_v40  ;;  %1031 = vperm.xlu0 %2307, %v2945_v40  }
 0x30d   :  { %v911_v60 = vpop.xlane.xlu1 %910  ;;  %1006 = vperm.xlu1 %2308, %v2893_v11   ;;  %1508 = vst.msk [vmem:[#allocation3 + $0x50] sm:$0xff] %vm93_vm0, %v2950_v49 }
 0x30e   :  { %v2965_v59 = vmax.f32 %v2947_v43, %v911_v60  ;;  %v913_v63 = vpop.xlane.xlu0 %912 }
 0x30f   :  { %v2970_v13 = vmax.f32 %v2957_v53, %v913_v63 }
 0x310   :  { %1509 = vst.msk [vmem:[#allocation3 + $0x58] sm:$0xff] %vm93_vm0, %v2965_v59  ;;  %1041 = vperm.xlu0 %2307, %v2965_v59  }
 0x311   :  { %v915_v24 = vpop.xlane.xlu1 %914  ;;  %1021 = vperm.xlu1 %2308, %v2926_v27   ;;  %1510 = vst.msk [vmem:[#allocation3 + $0x60] sm:$0xff] %vm93_vm0, %v2970_v13  ;;  %v3195_v17 = vsub.f32 %v2957_v53, %v2970_v13 }
 0x312   :  { %v2985_v28 = vmax.f32 %v2967_v5, %v915_v24  ;;  %v917_v29 = vpop.xlane.xlu0 %916 }
 0x313   :  { %v2990_v42 = vmax.f32 %v2977_v23, %v917_v29  ;;  %v976_v27 = vmul.f32 1.442695, %v3195_v17 }
 0x314   :  { %1511 = vst.msk [vmem:[#allocation3 + $0x68] sm:$0xff] %vm93_vm0, %v2985_v28  ;;  %1051 = vperm.xlu0 %2307, %v2985_v28   ;;  %v3198_v53 = vsub.f32 %v2967_v5, %v2985_v28 }
 0x315   :  { %v919_v63 = vpop.xlane.xlu1 %918  ;;  %1016 = vperm.xlu1 %2308, %v2912_v18   ;;  %1512 = vst.msk [vmem:[#allocation3 + $0x70] sm:$0xff] %vm93_vm0, %v2990_v42 }
 0x316   :  { %v3003_v29 = vmax.f32 %v2987_v37, %v919_v63 }
 0x318   :  { %1513 = vst.msk [vmem:[#allocation3 + $0x78] sm:$0xff] %vm93_vm0, %v3003_v29  ;;  %1061 = vperm.xlu0 %2307, %v3003_v29  }
 0x319   :  { %1026 = vperm.xlu1 %2308, %v2931_v31  }
 0x31d   :  { %1036 = vperm.xlu1 %2308, %v2950_v49  }
 0x321   :  { %1046 = vperm.xlu1 %2308, %v2970_v13  }
 0x325   :  { %1056 = vperm.xlu1 %2308, %v2990_v42  }
 0x378   :  { %v987_v24 = vpop.permute.xlu0 %986 }
 0x379   :  { %v1064_v63 = vsub.f32 %v2760_v54, %v987_v24 }
 0x37b   :  { %v1080_v16 = vmul.f32 1.442695, %v1064_v63 }
 0x37c   :  { %v992_v26 = vpop.permute.xlu1 %991 }
 0x37d   :  { %2309 = vpow2.f32 %v1080_v16  ;;  %v1065_v60 = vsub.f32 %v2770_v62, %v992_v26 }
 0x37f   :  { %v1082_v52 = vmul.f32 1.442695, %v1065_v60 }
 0x380   :  { %v1002_v2 = vpop.permute.xlu1 %1001 }
 0x381   :  { %2311 = vpow2.f32 %v1082_v52  ;;  %v1067_v32 = vsub.f32 %v2765_v58, %v1002_v2 }
 0x383   :  { %v1086_v39 = vmul.f32 1.442695, %v1067_v32 }
 0x384   :  { %v997_v21 = vpop.permute.xlu1 %996 }
 0x385   :  { %2313 = vpow2.f32 %v1086_v39  ;;  %v1066_v25 = vsub.f32 %v2775_v0, %v997_v21 }
 0x387   :  { %v2310_v46 = vpop.eup %2309  ;;  %v1084_v3 = vmul.f32 1.442695, %v1066_v25 }
 0x388   :  { %v1012_v38 = vpop.permute.xlu1 %1011  ;;  %1144 = vadd.xlane.f32.xlu1 %v2310_v46  ;;  %2112 = vmatprep.mubr.f32.mxu0 %v2310_v46 }
 0x389   :  { %2315 = vpow2.f32 %v1084_v3  ;;  %v1069_v54 = vsub.f32 %v2784_v8, %v1012_v38 }
 0x38b   :  { %v2312_v16 = vpop.eup %2311  ;;  %v1090_v62 = vmul.f32 1.442695, %v1069_v54  ;;  %v1032_v26 = vpop.permute.xlu0 %1031 }
 0x38c   :  { %v1007_v60 = vpop.permute.xlu1 %1006  ;;  %1146 = vadd.xlane.f32.xlu0 %v2312_v16  ;;  %2113 = vmatmul.mubr.f32.vlgmr.msra.gmra.mrb[32].mxu0 %v2312_v16  ;;  %v1073_v3 = vsub.f32 %v2804_v1, %v1032_v26 }
 0x38d   :  { %2317 = vpow2.f32 %v1090_v62  ;;  %v1068_v58 = vsub.f32 %v2780_v6, %v1007_v60 }
 0x38e   :  { %v1098_v6 = vmul.f32 1.442695, %v1073_v3 }
 0x38f   :  { %v2314_v32 = vpop.eup %2313  ;;  %v1088_v39 = vmul.f32 1.442695, %v1068_v58  ;;  %v1042_v0 = vpop.permute.xlu0 %1041 }
 0x390   :  { %v1022_v21 = vpop.permute.xlu1 %1021  ;;  %1150 = vadd.xlane.f32.xlu1 %v2314_v32  ;;  %v1075_v24 = vsub.f32 %v2814_v10, %v1042_v0 }
 0x391   :  { %2319 = vpow2.f32 %v1088_v39  ;;  %v1071_v46 = vsub.f32 %v2794_v55, %v1022_v21 }
 0x392   :  { %v1102_v1 = vmul.f32 1.442695, %v1075_v24 }
 0x393   :  { %v2316_v8 = vpop.eup %2315  ;;  %v1094_v38 = vmul.f32 1.442695, %v1071_v46  ;;  %v1052_v52 = vpop.permute.xlu0 %1051 }
 0x394   :  { %v1017_v25 = vpop.permute.xlu1 %1016  ;;  %1148 = vadd.xlane.f32.xlu0 %v2316_v8  ;;  %2115 = vmatprep.mubr.f32.mxu0 %v2316_v8  ;;  %v1077_v62 = vsub.f32 %v2824_v15, %v1052_v52 }
 0x395   :  { %2321 = vpow2.f32 %v1094_v38  ;;  %v1070_v2 = vsub.f32 %v2790_v51, %v1017_v25  ;;  %2116 = vmatmul.mubr.f32.gmra.mrb[34].mxu0 %v2314_v32 }
 0x396   :  { %v1106_v10 = vmul.f32 1.442695, %v1077_v62  ;;  %v3187_v62 = vsub.f32 %v2880_v47, %v2893_v11  ;;  %v3191_v47 = vsub.f32 %v2918_v22, %v2931_v31  ;;  %v3194_v22 = vsub.f32 %v2928_v9, %v2945_v40 }
 0x397   :  { %v2318_v63 = vpop.eup %2317  ;;  %v1092_v54 = vmul.f32 1.442695, %v1070_v2  ;;  %v1062_v60 = vpop.permute.xlu0 %1061  ;;  %v3197_v9 = vsub.f32 %v2977_v23, %v2990_v42  ;;  %v3199_v23 = vsub.f32 %v2987_v37, %v3003_v29  ;;  %v1112_v29 = vld [vmem:[#allocation4] sm:$0xff] }
 0x398   :  { %v1027_v16 = vpop.permute.xlu1 %1026  ;;  %1154 = vadd.xlane.f32.xlu1 %v2318_v63  ;;  %v1079_v32 = vsub.f32 %v2850_v20, %v1062_v60  ;;  %v968_v11 = vmul.f32 1.442695, %v3191_v47  ;;  %v970_v31 = vmul.f32 1.442695, %v3194_v22  ;;  %v1120_v22 = vld [vmem:[#allocation4 + $0x40] sm:$0xff] }
 0x399   :  { %2323 = vpow2.f32 %v1092_v54  ;;  %v1072_v55 = vsub.f32 %v2800_v61, %v1027_v16  ;;  %v954_v54 = vmul.f32 1.442695, %v937_v50  ;;  %v956_v16 = vmul.f32 1.442695, %v938_v48 }
 0x39a   :  { %2325 = vpow2.f32 %v1098_v6  ;;  %v1110_v46 = vmul.f32 1.442695, %v1079_v32  ;;  %v3189_v50 = vsub.f32 %v2899_v57, %v2912_v18  ;;  %v980_v40 = vmul.f32 1.442695, %v3197_v9 }
 0x39b   :  { %v2320_v26 = vpop.eup %2319  ;;  %v1096_v58 = vmul.f32 1.442695, %v1072_v55  ;;  %v3186_v55 = vsub.f32 %v2854_v30, %v2857_v34  ;;  %v3190_v30 = vsub.f32 %v2890_v4, %v2907_v12  ;;  %v3193_v4 = vsub.f32 %v2937_v33, %v2950_v49 }
 0x39c   :  { %v1037_v39 = vpop.permute.xlu1 %1036  ;;  %1152 = vadd.xlane.f32.xlu0 %v2320_v26  ;;  %2118 = vmatprep.mubr.f32.mxu0 %v2320_v26  ;;  %v960_v26 = vmul.f32 1.442695, %v3187_v62  ;;  %v964_v45 = vmul.f32 1.442695, %v3189_v50  ;;  %v3196_v33 = vsub.f32 %v2947_v43, %v2965_v59  ;;  %v978_v43 = vmul.f32 1.442695, %v3198_v53 }
 0x39d   :  { %2327 = vpow2.f32 %v1096_v58  ;;  %v1074_v51 = vsub.f32 %v2810_v7, %v1037_v39  ;;  %2119 = vmatmul.mubr.f32.gmra.mrb[36].mxu0 %v2318_v63  ;;  %v962_v34 = vmul.f32 1.442695, %v3190_v30  ;;  %v972_v57 = vmul.f32 1.442695, %v3193_v4  ;;  %v1119_v50 = vld [vmem:[#allocation4 + $0x38] sm:$0xff] }
 0x39e   :  { %2329 = vpow2.f32 %v1102_v1  ;;  %v952_v1 = vmul.f32 1.442695, %v3186_v55  ;;  %v974_v49 = vmul.f32 1.442695, %v3196_v33  ;;  %v982_v42 = vmul.f32 1.442695, %v3199_v23 }
 0x39f   :  { %v2322_v0 = vpop.eup %2321  ;;  %v1100_v61 = vmul.f32 1.442695, %v1074_v51  ;;  %v1125_v23 = vld [vmem:[#allocation4 + $0x68] sm:$0xff] }
 0x3a0   :  { %v1047_v21 = vpop.permute.xlu1 %1046  ;;  %1158 = vadd.xlane.f32.xlu1 %v2322_v0 }
 0x3a1   :  { %2331 = vpow2.f32 %v1100_v61  ;;  %v1076_v15 = vsub.f32 %v2820_v14, %v1047_v21 }
 0x3a2   :  { %2333 = vpow2.f32 %v1106_v10 }
 0x3a3   :  { %v2324_v3 = vpop.eup %2323  ;;  %v1104_v8 = vmul.f32 1.442695, %v1076_v15  ;;  %v1113_v15 = vld [vmem:[#allocation4 + $0x8] sm:$0xff] }
 0x3a4   :  { %v2326_v38 = vpop.eup %2325  ;;  %v1057_v25 = vpop.permute.xlu1 %1056  ;;  %1156 = vadd.xlane.f32.xlu0 %v2324_v3  ;;  %2121 = vmatprep.mubr.f32.mxu0 %v2324_v3 }
 0x3a5   :  { %2335 = vpow2.f32 %v1104_v8  ;;  %v1078_v7 = vsub.f32 %v2846_v19, %v1057_v25  ;;  %1162 = vadd.xlane.f32.xlu1 %v2326_v38  ;;  %2122 = vmatmul.mubr.f32.gmra.mrb[38].mxu0 %v2322_v0 }
 0x3a6   :  { %2337 = vpow2.f32 %v1110_v46 }
 0x3a7   :  { %v2328_v20 = vpop.eup %2327  ;;  %v1108_v52 = vmul.f32 1.442695, %v1078_v7 }
 0x3a8   :  { %v2330_v2 = vpop.eup %2329  ;;  %1160 = vadd.xlane.f32.xlu0 %v2328_v20  ;;  %2124 = vmatprep.mubr.f32.mxu0 %v2328_v20 }
 0x3a9   :  { %2339 = vpow2.f32 %v1108_v52  ;;  %1166 = vadd.xlane.f32.xlu1 %v2330_v2  ;;  %2125 = vmatmul.mubr.f32.gmra.mrb[40].mxu0 %v2326_v38  ;;  %v1115_v38 = vld [vmem:[#allocation4 + $0x18] sm:$0xff]  ;;  %v1114_v52 = vld [vmem:[#allocation4 + $0x10] sm:$0xff] }
 0x3aa   :  { %2341 = vpow2.f32 %v954_v54 }
 0x3ab   :  { %v2332_v14 = vpop.eup %2331  ;;  %2343 = vpow2.f32 %v956_v16 }
 0x3ac   :  { %v2334_v6 = vpop.eup %2333  ;;  %1164 = vadd.xlane.f32.xlu0 %v2332_v14  ;;  %2127 = vmatprep.mubr.f32.mxu0 %v2332_v14  ;;  %2345 = vpow2.f32 %v952_v1  ;;  %v1116_v1 = vld [vmem:[#allocation4 + $0x20] sm:$0xff] }
 0x3ad   :  { %1170 = vadd.xlane.f32.xlu1 %v2334_v6  ;;  %2128 = vmatmul.mubr.f32.gmra.mrb[42].mxu0 %v2330_v2  ;;  %2347 = vpow2.f32 %v960_v26 }
 0x3ae   :  { %2349 = vpow2.f32 %v958_v44 }
 0x3af   :  { %v2336_v24 = vpop.eup %2335  ;;  %2351 = vpow2.f32 %v964_v45 }
 0x3b0   :  { %v2338_v63 = vpop.eup %2337  ;;  %1168 = vadd.xlane.f32.xlu0 %v2336_v24  ;;  %2130 = vmatprep.mubr.f32.mxu0 %v2336_v24  ;;  %2353 = vpow2.f32 %v962_v34 }
 0x3b1   :  { %1174 = vadd.xlane.f32.xlu1 %v2338_v63  ;;  %2131 = vmatmul.mubr.f32.gmra.mrb[44].mxu0 %v2334_v6  ;;  %2355 = vpow2.f32 %v968_v11  ;;  %v1118_v11 = vld [vmem:[#allocation4 + $0x30] sm:$0xff] }
 0x3b2   :  { %2357 = vpow2.f32 %v966_v41  ;;  %v1121_v41 = vld [vmem:[#allocation4 + $0x48] sm:$0xff] }
 0x3b3   :  { %v2340_v19 = vpop.eup %2339  ;;  %2359 = vpow2.f32 %v972_v57 }
 0x3b4   :  { %1172 = vadd.xlane.f32.xlu0 %v2340_v19  ;;  %2133 = vmatprep.mubr.f32.mxu0 %v2340_v19  ;;  %v2342_v56 = vpop.eup %2341  ;;  %2361 = vpow2.f32 %v970_v31 }
 0x3b5   :  { %2134 = vmatmul.mubr.f32.gmra.mrb[46].mxu0 %v2338_v63  ;;  %v3054_v48 = vpop.eup %2343  ;;  %2363 = vpow2.f32 %v976_v27  ;;  %v1129_v3 = vmul.f32 %v2342_v56, %v1113_v15  ;;  %v1117_v63 = vld [vmem:[#allocation4 + $0x28] sm:$0xff] }
 0x3b6   :  { %v2346_v12 = vpop.eup %2345  ;;  %2365 = vpow2.f32 %v974_v49  ;;  %v1130_v6 = vmul.f32 %v3054_v48, %v1114_v52 }
 0x3b7   :  { %v3063_v18 = vpop.eup %2347  ;;  %2367 = vpow2.f32 %v980_v40  ;;  %v1128_v61 = vmul.f32 %v2346_v12, %v1112_v29 }
 0x3b8   :  { %v2350_v60 = vpop.eup %2349  ;;  %2369 = vpow2.f32 %v978_v43  ;;  %v1132_v36 = vmul.f32 %v3063_v18, %v1116_v1 }
 0x3b9   :  { %v3072_v58 = vpop.eup %2351  ;;  %2371 = vpow2.f32 %v982_v42  ;;  %v1131_v7 = vmul.f32 %v2350_v60, %v1115_v38 }
 0x3ba   :  { %v2354_v39 = vpop.eup %2353  ;;  %v1134_v57 = vmul.f32 %v3072_v58, %v1118_v11 }
 0x3bb   :  { %v3081_v51 = vpop.eup %2355  ;;  %v1133_v16 = vmul.f32 %v2354_v39, %v1117_v63 }
 0x3bc   :  { %v2358_v59 = vpop.eup %2357  ;;  %v1136_v9 = vmul.f32 %v3081_v51, %v1120_v22 }
 0x3bd   :  { %v3087_v13 = vpop.eup %2359  ;;  %v1135_v34 = vmul.f32 %v2358_v59, %v1119_v50 }
 0x3be   :  { %v3093_v10 = vpop.eup %2361 }
 0x3bf   :  { %v3095_v32 = vpop.eup %2363 }
 0x3c0   :  { %v3099_v5 = vpop.eup %2365 }
 0x3c1   :  { %v3101_v28 = vpop.eup %2367 }
 0x3c2   :  { %1232 = vperm.xlu1 %2308, %v2342_v56   ;;  %v3105_v0 = vpop.eup %2369 }
 0x3c3   :  { %v3108_v37 = vpop.eup %2371 }
 0x3c6   :  { %1237 = vperm.xlu1 %2308, %v3054_v48  }
 0x3ca   :  { %1247 = vperm.xlu1 %2308, %v3063_v18   ;;  %1227 = vperm.xlu0 %2307, %v2346_v12   ;;  %v1137_v12 = vmul.f32 %v3093_v10, %v1121_v41 }
 0x3ce   :  { %1257 = vperm.xlu1 %2308, %v3072_v58   ;;  %1242 = vperm.xlu0 %2307, %v2350_v60   ;;  %v1123_v60 = vld [vmem:[#allocation4 + $0x58] sm:$0xff] }
 0x3cf   :  { %v1139_v58 = vmul.f32 %v3099_v5, %v1123_v60 }
 0x3d2   :  { %1267 = vperm.xlu1 %2308, %v3081_v51   ;;  %1252 = vperm.xlu0 %2307, %v2354_v39   ;;  %v1122_v39 = vld [vmem:[#allocation4 + $0x50] sm:$0xff]  ;;  %v1141_v51 = vmul.f32 %v3105_v0, %v1125_v23 }
 0x3d3   :  { %v1138_v29 = vmul.f32 %v3087_v13, %v1122_v39 }
 0x3d6   :  { %1277 = vperm.xlu1 %2308, %v3087_v13   ;;  %1262 = vperm.xlu0 %2307, %v2358_v59  }
 0x3da   :  { %1287 = vperm.xlu1 %2308, %v3095_v32   ;;  %1272 = vperm.xlu0 %2307, %v3093_v10  }
 0x3de   :  { %1297 = vperm.xlu1 %2308, %v3101_v28   ;;  %1282 = vperm.xlu0 %2307, %v3099_v5   ;;  %v1124_v5 = vld [vmem:[#allocation4 + $0x60] sm:$0xff] }
 0x3e2   :  { %1292 = vperm.xlu0 %2307, %v3105_v0  }
 0x3e6   :  { %1302 = vperm.xlu0 %2307, %v3108_v37  }
 0x415   :  { %v1145_v21 = vpop.xlane.xlu1 %1144 }
 0x416   :  { %v1176_v46 = vadd.f32 %v1145_v21, %v1128_v61 }
 0x418   :  { %1193 = vst.msk [vmem:[#allocation4] sm:$0xff] %vm93_vm0, %v1176_v46 }
 0x419   :  { %v1147_v8 = vpop.xlane.xlu0 %1146 }
 0x41a   :  { %v1177_v25 = vadd.f32 %v1147_v8, %v1129_v3  ;;  %v1127_v3 = vld [vmem:[#allocation4 + $0x78] sm:$0xff] }
 0x41b   :  { %v1143_v13 = vmul.f32 %v3108_v37, %v1127_v3 }
 0x41c   :  { %1194 = vst.msk [vmem:[#allocation4 + $0x8] sm:$0xff] %vm93_vm0, %v1177_v25  ;;  %v1140_v25 = vmul.f32 %v3095_v32, %v1124_v5 }
 0x41d   :  { %v1151_v20 = vpop.xlane.xlu1 %1150 }
 0x41e   :  { %v1179_v2 = vadd.f32 %v1151_v20, %v1131_v7  ;;  %v1126_v20 = vld [vmem:[#allocation4 + $0x70] sm:$0xff] }
 0x41f   :  { %v1517_v14 = vld [vmem:[#allocation4] sm:$0xff]  ;;  %v1142_v63 = vmul.f32 %v3101_v28, %v1126_v20 }
 0x420   :  { %1196 = vst.msk [vmem:[#allocation4 + $0x18] sm:$0xff] %vm93_vm0, %v1179_v2  ;;  %2373 = vrcp.f32 %v1517_v14 }
 0x421   :  { %v1149_v24 = vpop.xlane.xlu0 %1148 }
 0x422   :  { %v1178_v19 = vadd.f32 %v1149_v24, %v1130_v6 }
 0x423   :  { %v1518_v54 = vld [vmem:[#allocation4 + $0x8] sm:$0xff] }
 0x424   :  { %1195 = vst.msk [vmem:[#allocation4 + $0x10] sm:$0xff] %vm93_vm0, %v1178_v19  ;;  %2375 = vrcp.f32 %v1518_v54 }
 0x425   :  { %v1155_v55 = vpop.xlane.xlu1 %1154 }
 0x426   :  { %v1181_v62 = vadd.f32 %v1155_v55, %v1133_v16 }
 0x427   :  { %v1520_v26 = vld [vmem:[#allocation4 + $0x18] sm:$0xff] }
 0x428   :  { %1198 = vst.msk [vmem:[#allocation4 + $0x28] sm:$0xff] %vm93_vm0, %v1181_v62  ;;  %2377 = vrcp.f32 %v1520_v26 }
 0x429   :  { %v1153_v44 = vpop.xlane.xlu0 %1152 }
 0x42a   :  { %v2374_v45 = vpop.eup %2373  ;;  %v1180_v56 = vadd.f32 %v1153_v44, %v1132_v36 }
 0x42b   :  { %1567 = vperm.xlu1 %2308, %v2374_v45   ;;  %v1519_v30 = vld [vmem:[#allocation4 + $0x10] sm:$0xff] }
 0x42c   :  { %1197 = vst.msk [vmem:[#allocation4 + $0x20] sm:$0xff] %vm93_vm0, %v1180_v56  ;;  %2379 = vrcp.f32 %v1519_v30 }
 0x42d   :  { %v1159_v47 = vpop.xlane.xlu1 %1158 }
 0x42e   :  { %v2376_v48 = vpop.eup %2375  ;;  %v1183_v35 = vadd.f32 %v1159_v47, %v1135_v34 }
 0x42f   :  { %1572 = vperm.xlu0 %2307, %v2376_v48   ;;  %v1522_v4 = vld [vmem:[#allocation4 + $0x28] sm:$0xff] }
 0x430   :  { %1200 = vst.msk [vmem:[#allocation4 + $0x38] sm:$0xff] %vm93_vm0, %v1183_v35  ;;  %2381 = vrcp.f32 %v1522_v4 }
 0x431   :  { %v1157_v18 = vpop.xlane.xlu0 %1156 }
 0x432   :  { %v2378_v31 = vpop.eup %2377  ;;  %v1163_v17 = vpop.xlane.xlu1 %1162  ;;  %v1182_v27 = vadd.f32 %v1157_v18, %v1134_v57 }
 0x433   :  { %v1185_v33 = vadd.f32 %v1163_v17, %v1137_v12  ;;  %1582 = vperm.xlu0 %2307, %v2378_v31   ;;  %v1521_v49 = vld [vmem:[#allocation4 + $0x20] sm:$0xff] }
 0x434   :  { %1199 = vst.msk [vmem:[#allocation4 + $0x30] sm:$0xff] %vm93_vm0, %v1182_v27  ;;  %2383 = vrcp.f32 %v1521_v49 }
 0x435   :  { %1202 = vst.msk [vmem:[#allocation4 + $0x48] sm:$0xff] %vm93_vm0, %v1185_v33  ;;  %v1161_v40 = vpop.xlane.xlu0 %1160 }
 0x436   :  { %v2380_v53 = vpop.eup %2379  ;;  %v1167_v43 = vpop.xlane.xlu1 %1166  ;;  %v1184_v59 = vadd.f32 %v1161_v40, %v1136_v9 }
 0x437   :  { %v1187_v42 = vadd.f32 %v1167_v43, %v1139_v58  ;;  %1577 = vperm.xlu1 %2308, %v2380_v53   ;;  %v1524_v10 = vld [vmem:[#allocation4 + $0x38] sm:$0xff] }
 0x438   :  { %1201 = vst.msk [vmem:[#allocation4 + $0x40] sm:$0xff] %vm93_vm0, %v1184_v59  ;;  %2385 = vrcp.f32 %v1524_v10 }
 0x439   :  { %1204 = vst.msk [vmem:[#allocation4 + $0x58] sm:$0xff] %vm93_vm0, %v1187_v42  ;;  %v1165_v61 = vpop.xlane.xlu0 %1164 }
 0x43a   :  { %v2382_v21 = vpop.eup %2381  ;;  %v1171_v15 = vpop.xlane.xlu1 %1170  ;;  %v1186_v46 = vadd.f32 %v1165_v61, %v1138_v29 }
 0x43b   :  { %v1189_v8 = vadd.f32 %v1171_v15, %v1141_v51  ;;  %1592 = vperm.xlu0 %2307, %v2382_v21   ;;  %v1523_v38 = vld [vmem:[#allocation4 + $0x30] sm:$0xff] }
 0x43c   :  { %1203 = vst.msk [vmem:[#allocation4 + $0x50] sm:$0xff] %vm93_vm0, %v1186_v46  ;;  %v1526_v7 = vld [vmem:[#allocation4 + $0x48] sm:$0xff]  ;;  %2387 = vrcp.f32 %v1523_v38 }
 0x43d   :  { %1206 = vst.msk [vmem:[#allocation4 + $0x68] sm:$0xff] %vm93_vm0, %v1189_v8  ;;  %v1169_v0 = vpop.xlane.xlu0 %1168  ;;  %2389 = vrcp.f32 %v1526_v7 }
 0x43e   :  { %v2384_v52 = vpop.eup %2383  ;;  %v1175_v2 = vpop.xlane.xlu1 %1174  ;;  %v1188_v14 = vadd.f32 %v1169_v0, %v1140_v25 }
 0x43f   :  { %v1191_v6 = vadd.f32 %v1175_v2, %v1143_v13  ;;  %1587 = vperm.xlu1 %2308, %v2384_v52   ;;  %v1525_v24 = vld [vmem:[#allocation4 + $0x40] sm:$0xff] }
 0x440   :  { %1205 = vst.msk [vmem:[#allocation4 + $0x60] sm:$0xff] %vm93_vm0, %v1188_v14  ;;  %v1528_v32 = vld [vmem:[#allocation4 + $0x58] sm:$0xff]  ;;  %2391 = vrcp.f32 %v1525_v24 }
 0x441   :  { %1208 = vst.msk [vmem:[#allocation4 + $0x78] sm:$0xff] %vm93_vm0, %v1191_v6  ;;  %v1173_v19 = vpop.xlane.xlu0 %1172  ;;  %2393 = vrcp.f32 %v1528_v32 }
 0x442   :  { %v2386_v37 = vpop.eup %2385  ;;  %v1190_v54 = vadd.f32 %v1173_v19, %v1142_v63  ;;  %v1233_v22 = vpop.permute.xlu1 %1232 }
 0x443   :  { %1602 = vperm.xlu0 %2307, %v2386_v37   ;;  %v1527_v16 = vld [vmem:[#allocation4 + $0x50] sm:$0xff]  ;;  %v1306_v25 = vmul.f32 0.0, %v1233_v22 }
 0x444   :  { %1207 = vst.msk [vmem:[#allocation4 + $0x70] sm:$0xff] %vm93_vm0, %v1190_v54  ;;  %v1530_v55 = vld [vmem:[#allocation4 + $0x68] sm:$0xff]  ;;  %2395 = vrcp.f32 %v1527_v16 }
 0x445   :  { %2397 = vrcp.f32 %v1530_v55 }
 0x446   :  { %v2388_v1 = vpop.eup %2387  ;;  %v1238_v49 = vpop.permute.xlu1 %1237 }
 0x447   :  { %v2390_v62 = vpop.eup %2389  ;;  %1597 = vperm.xlu1 %2308, %v2388_v1   ;;  %v1529_v26 = vld [vmem:[#allocation4 + $0x60] sm:$0xff]  ;;  %v1307_v6 = vmul.f32 0.0, %v1238_v49 }
 0x448   :  { %1612 = vperm.xlu0 %2307, %v2390_v62   ;;  %v1532_v28 = vld [vmem:[#allocation4 + $0x78] sm:$0xff]  ;;  %2399 = vrcp.f32 %v1529_v26 }
 0x449   :  { %2401 = vrcp.f32 %v1532_v28  ;;  %v1228_v27 = vpop.permute.xlu0 %1227 }
 0x44a   :  { %v2392_v36 = vpop.eup %2391  ;;  %v1248_v39 = vpop.permute.xlu1 %1247  ;;  %v1305_v46 = vmul.f32 0.0, %v1228_v27 }
 0x44b   :  { %v2394_v44 = vpop.eup %2393  ;;  %1607 = vperm.xlu1 %2308, %v2392_v36   ;;  %v1531_v50 = vld [vmem:[#allocation4 + $0x70] sm:$0xff]  ;;  %v1309_v55 = vmul.f32 0.0, %v1248_v39 }
 0x44c   :  { %1622 = vperm.xlu0 %2307, %v2394_v44   ;;  %2403 = vrcp.f32 %v1531_v50 }
 0x44d   :  { %v1243_v40 = vpop.permute.xlu0 %1242 }
 0x44e   :  { %v2396_v45 = vpop.eup %2395  ;;  %v1258_v23 = vpop.permute.xlu1 %1257  ;;  %v1308_v20 = vmul.f32 0.0, %v1243_v40 }
 0x44f   :  { %v2398_v56 = vpop.eup %2397  ;;  %1617 = vperm.xlu1 %2308, %v2396_v45   ;;  %v1311_v45 = vmul.f32 0.0, %v1258_v23 }
 0x450   :  { %1632 = vperm.xlu0 %2307, %v2398_v56  }
 0x451   :  { %v1253_v59 = vpop.permute.xlu0 %1252 }
 0x452   :  { %v2400_v30 = vpop.eup %2399  ;;  %v1268_v10 = vpop.permute.xlu1 %1267  ;;  %v1310_v19 = vmul.f32 0.0, %v1253_v59 }
 0x453   :  { %v2402_v34 = vpop.eup %2401  ;;  %1627 = vperm.xlu1 %2308, %v2400_v30  }
 0x454   :  { %1642 = vperm.xlu0 %2307, %v2402_v34  }
 0x455   :  { %v1263_v42 = vpop.permute.xlu0 %1262 }
 0x456   :  { %v2404_v47 = vpop.eup %2403  ;;  %v1278_v51 = vpop.permute.xlu1 %1277  ;;  %v1312_v28 = vmul.f32 0.0, %v1263_v42 }
 0x457   :  { %1637 = vperm.xlu1 %2308, %v2404_v47   ;;  %v1315_v49 = vmul.f32 0.0, %v1278_v51 }
 0x459   :  { %v1273_v29 = vpop.permute.xlu0 %1272 }
 0x45a   :  { %v3152_v5 = vpop.permute.xlu1 %1287  ;;  %v1314_v30 = vmul.f32 0.0, %v1273_v29 }
 0x45d   :  { %v1283_v61 = vpop.permute.xlu0 %1282 }
 0x45e   :  { %v3154_v15 = vpop.permute.xlu1 %1297 }
 0x45f   :  { %v2114_v11 = vpop.f32.mrb[32].mxu0 }
 0x460   :  { %v1387_v48 = vpop.f32.mrb[33].mxu0  ;;  %v1467_v13 = vadd.f32 %v2114_v11, %v1306_v25 }
 0x461   :  { %v1293_v21 = vpop.permute.xlu0 %1292  ;;  %v1466_v3 = vadd.f32 %v1387_v48, %v1305_v46  ;;  %v1313_v48 = vmul.f32 0.0, %v1268_v10  ;;  %v1317_v10 = vmul.f32 0.0, %v3152_v5 }
 0x462   :  { %v1318_v59 = vmul.f32 0.0, %v1293_v21 }
 0x465   :  { %v1303_v8 = vpop.permute.xlu0 %1302 }
 0x468   :  { %v2117_v35 = vpop.f32.mrb[34].mxu0 }
 0x469   :  { %v1397_v41 = vpop.f32.mrb[35].mxu0  ;;  %v1469_v2 = vadd.f32 %v2117_v35, %v1308_v20 }
 0x46a   :  { %v1468_v63 = vadd.f32 %v1397_v41, %v1307_v6 }
 0x470   :  { %v2120_v4 = vpop.f32.mrb[36].mxu0 }
 0x471   :  { %v1407_v57 = vpop.f32.mrb[37].mxu0  ;;  %v1471_v54 = vadd.f32 %v2120_v4, %v1310_v19  ;;  %v1316_v4 = vmul.f32 0.0, %v1283_v61  ;;  %v1320_v61 = vmul.f32 0.0, %v1303_v8 }
 0x472   :  { %v1470_v62 = vadd.f32 %v1407_v57, %v1309_v55 }
 0x478   :  { %v2123_v12 = vpop.f32.mrb[38].mxu0 }
 0x479   :  { %v1417_v18 = vpop.f32.mrb[39].mxu0  ;;  %v1473_v44 = vadd.f32 %v2123_v12, %v1312_v28 }
 0x47a   :  { %v1472_v34 = vadd.f32 %v1417_v18, %v1311_v45 }
 0x47c   :  { %v2126_v31 = vpop.f32.mrb[40].mxu0 }
 0x47d   :  { %v3138_v17 = vpop.f32.mrb[41].mxu0  ;;  %v1475_v47 = vadd.f32 %v2126_v31, %v1314_v30 }
 0x47e   :  { %v1474_v57 = vadd.f32 %v3138_v17, %v1313_v48 }
 0x480   :  { %v3140_v60 = vpop.f32.mrb[42].mxu0 }
 0x481   :  { %v3142_v33 = vpop.f32.mrb[43].mxu0  ;;  %v1477_v27 = vadd.f32 %v3140_v60, %v1316_v4 }
 0x482   :  { %v1476_v31 = vadd.f32 %v3142_v33, %v1315_v49  ;;  %v1319_v33 = vmul.f32 0.0, %v3154_v15 }
 0x484   :  { %v3144_v9 = vpop.f32.mrb[44].mxu0 }
 0x485   :  { %v3146_v58 = vpop.f32.mrb[45].mxu0  ;;  %v1479_v23 = vadd.f32 %v3144_v9, %v1318_v59 }
 0x486   :  { %v1478_v46 = vadd.f32 %v3146_v58, %v1317_v10 }
 0x488   :  { %v3148_v53 = vpop.f32.mrb[46].mxu0 }
 0x489   :  { %v3150_v43 = vpop.f32.mrb[47].mxu0  ;;  %v1481_v51 = vadd.f32 %v3148_v53, %v1320_v61 }
 0x48a   :  { %v1480_v5 = vadd.f32 %v3150_v43, %v1319_v33 }
 0x4aa   :  { %v1568_v38 = vpop.permute.xlu1 %1567 }
 0x4ab   :  { %v1645_v7 = vmul.f32 %v1568_v38, %v1466_v3 }
 0x4ad   :  { %1661 = vst [vmem:[#allocation15] sm:$0xff] %v1645_v7 }
 0x4ae   :  { %v1573_v0 = vpop.permute.xlu0 %1572 }
 0x4af   :  { %v1646_v52 = vmul.f32 %v1573_v0, %v1467_v13 }
 0x4b1   :  { %1662 = vst [vmem:[#allocation15 + $0x8] sm:$0xff] %v1646_v52 }
 0x4b2   :  { %v1583_v14 = vpop.permute.xlu0 %1582 }
 0x4b3   :  { %v1648_v24 = vmul.f32 %v1583_v14, %v1469_v2 }
 0x4b5   :  { %1664 = vst [vmem:[#allocation15 + $0x18] sm:$0xff] %v1648_v24 }
 0x4b6   :  { %v1578_v32 = vpop.permute.xlu1 %1577 }
 0x4b7   :  { %v1647_v37 = vmul.f32 %v1578_v32, %v1468_v63 }
 0x4b9   :  { %1663 = vst [vmem:[#allocation15 + $0x10] sm:$0xff] %v1647_v37 }
 0x4ba   :  { %v1593_v16 = vpop.permute.xlu0 %1592 }
 0x4bb   :  { %v1650_v1 = vmul.f32 %v1593_v16, %v1471_v54 }
 0x4bd   :  { %1666 = vst [vmem:[#allocation15 + $0x28] sm:$0xff] %v1650_v1 }
 0x4be   :  { %v1588_v26 = vpop.permute.xlu1 %1587 }
 0x4bf   :  { %v1649_v36 = vmul.f32 %v1588_v26, %v1470_v62 }
 0x4c1   :  { %1665 = vst [vmem:[#allocation15 + $0x20] sm:$0xff] %v1649_v36 }
 0x4c2   :  { %v1603_v50 = vpop.permute.xlu0 %1602 }
 0x4c3   :  { %v1652_v56 = vmul.f32 %v1603_v50, %v1473_v44 }
 0x4c5   :  { %1668 = vst [vmem:[#allocation15 + $0x38] sm:$0xff] %v1652_v56 }
 0x4c6   :  { %v1598_v11 = vpop.permute.xlu1 %1597 }
 0x4c7   :  { %v1613_v35 = vpop.permute.xlu0 %1612  ;;  %v1651_v41 = vmul.f32 %v1598_v11, %v1472_v34 }
 0x4c8   :  { %v1654_v22 = vmul.f32 %v1613_v35, %v1475_v47 }
 0x4c9   :  { %1667 = vst [vmem:[#allocation15 + $0x30] sm:$0xff] %v1651_v41 }
 0x4ca   :  { %1670 = vst [vmem:[#allocation15 + $0x48] sm:$0xff] %v1654_v22  ;;  %v1608_v12 = vpop.permute.xlu1 %1607 }
 0x4cb   :  { %v1623_v40 = vpop.permute.xlu0 %1622  ;;  %v1653_v39 = vmul.f32 %v1608_v12, %v1474_v57 }
 0x4cc   :  { %v1656_v18 = vmul.f32 %v1623_v40, %v1477_v27 }
 0x4cd   :  { %1669 = vst [vmem:[#allocation15 + $0x40] sm:$0xff] %v1653_v39 }
 0x4ce   :  { %1672 = vst [vmem:[#allocation15 + $0x58] sm:$0xff] %v1656_v18  ;;  %v1618_v42 = vpop.permute.xlu1 %1617 }
 0x4cf   :  { %v1633_v17 = vpop.permute.xlu0 %1632  ;;  %v1655_v29 = vmul.f32 %v1618_v42, %v1476_v31 }
 0x4d0   :  { %v1658_v60 = vmul.f32 %v1633_v17, %v1479_v23 }
 0x4d1   :  { %1671 = vst [vmem:[#allocation15 + $0x50] sm:$0xff] %v1655_v29 }
 0x4d2   :  { %1674 = vst [vmem:[#allocation15 + $0x68] sm:$0xff] %v1658_v60  ;;  %v1628_v21 = vpop.permute.xlu1 %1627 }
 0x4d3   :  { %v1643_v3 = vpop.permute.xlu0 %1642  ;;  %v1657_v38 = vmul.f32 %v1628_v21, %v1478_v46 }
 0x4d4   :  { %v1660_v9 = vmul.f32 %v1643_v3, %v1481_v51 }
 0x4d5   :  { %1673 = vst [vmem:[#allocation15 + $0x60] sm:$0xff] %v1657_v38 }
 0x4d6   :  { %1676 = vst [vmem:[#allocation15 + $0x78] sm:$0xff] %v1660_v9  ;;  %v1638_v8 = vpop.permute.xlu1 %1637 }
 0x4d7   :  { %v1659_v25 = vmul.f32 %v1638_v8, %v1480_v5 }
 0x4d9   :  { %1675 = vst [vmem:[#allocation15 + $0x70] sm:$0xff] %v1659_v25 }
 0x4da   :  { %2526 = shalt.err (!%p2523_p2)
}
 0x4db   :  { %s2527_s7 = scalar_lea.hbm %s3185_s5, 2048 }
 0x4dc   :  { %p2528_p3 = scmp.ne.s32.totalorder %s3185_s5, %s2527_s7  ;;  %p2531_p4 = scmp.lt.u32.totalorder %s2527_s7, %s3185_s5 }
 0x4de   :  { %p2533_p5 = pnand %p2531_p4, %p2528_p3 }
 0x4e0   :  { %2536 = shalt.err (!%p2533_p5)
}
 0x4e1   :  { %1688 = dma.vmem_to_hbm [thread:$0]  %s1683_s28, 2048, %s3185_s5, [#allocation8], %s2547_s30, %s2547_s30, %s2548_s6  }
 0x4e2   :  { %2543 = dma.done.wait [#allocation8], 2048  }
 0x4e3   :  { %2544 = vsyncadd [#allocation8], 4294965248 }
 0x4e4   :  { %1692 = vsyncpa [#allocation7], 1 }
 0x4e5   :  { %1693 = vsyncpa [#allocation10], 1 }
 0x4e6   :  { %1694 = vsyncpa [#allocation13], 1 }
 0x4e7   :  { %1695 = vsyncpa [#allocation8], 1 }

</bundles_post_ra>
